<compile_context>
chip_gen: v7x
topology: tpu7x:2x2x1
jax: 0.10.0
libtpu: 0.0.40
codegen_flags: <defaults>
</compile_context>

<pallas_src>
import functools

import jax
import jax.numpy as jnp
from jax.experimental import pallas as pl
from jax.experimental.pallas import tpu as pltpu


# --------------------------------------------------------------------------- encoder kernel

def _encoder_kernel(x_ref, w1_ref, b1_ref, w2_ref, b2_ref, w3_ref, b3_ref,
                    wma_ref, bma_ref, wmb_ref, bmb_ref,
                    wva_ref, bva_ref, wvb_ref, bvb_ref,
                    eps_ref, ctx_ref, *, B, N):
    # Per-point MLP (Conv1d k=1 chain) -> per-cloud max-pool -> fc_mu / fc_sigma heads
    # -> reparameterize_gaussian, all fused.  x_ref: (B*N, 3) -> ctx_ref: (B, zdim).
    # TODO(synk): eval-mode BatchNorm1d affine/running-stats omitted (would fold into
    # these linear weights/biases when loading a real checkpoint).
    x = x_ref[...]                                                         # f32, K=3 stays f32
    h = jnp.maximum(
        jnp.dot(x, w1_ref[...], preferred_element_type=jnp.float32) + b1_ref[...], 0.0)
    h = jnp.maximum(
        jnp.dot(h.astype(jnp.bfloat16), w2_ref[...],
                preferred_element_type=jnp.float32) + b2_ref[...], 0.0)
    h = jnp.dot(h.astype(jnp.bfloat16), w3_ref[...],
                preferred_element_type=jnp.float32) + b3_ref[...]          # (B*N, 128) f32

    g = jnp.max(h.reshape(B, N, h.shape[-1]), axis=1)                      # (B, 128) full-tile
    gb = g.astype(jnp.bfloat16)

    hm = jnp.maximum(
        jnp.dot(gb, wma_ref[...], preferred_element_type=jnp.float32) + bma_ref[...], 0.0)
    mu = jnp.dot(hm.astype(jnp.bfloat16), wmb_ref[...],
                 preferred_element_type=jnp.float32) + bmb_ref[...]        # (B, zdim)
    hv = jnp.maximum(
        jnp.dot(gb, wva_ref[...], preferred_element_type=jnp.float32) + bva_ref[...], 0.0)
    logv = jnp.dot(hv.astype(jnp.bfloat16), wvb_ref[...],
                   preferred_element_type=jnp.float32) + bvb_ref[...]      # (B, zdim)

    # reparameterize_gaussian(mean=mu, logvar=logv)
    ctx_ref[...] = mu + jnp.exp(0.5 * logv) * eps_ref[...]


def encoder_context(x_flat, eps, enc_params, fcm_params, fcv_params, *, B, N):
    """Fused encoder + heads + reparameterization. x_flat: (B*N, 3) -> context (B, zdim)."""
    (w1, b1), (w2, b2), (w3, b3) = enc_params
    (wma, bma), (wmb, bmb) = fcm_params
    (wva, bva), (wvb, bvb) = fcv_params
    zdim = wmb.shape[1]
    bf = jnp.bfloat16
    return pl.pallas_call(
        functools.partial(_encoder_kernel, B=B, N=N),
        out_shape=jax.ShapeDtypeStruct((B, zdim), jnp.float32),
    )(x_flat,
      w1, b1.reshape(1, -1),
      w2.astype(bf), b2.reshape(1, -1),
      w3.astype(bf), b3.reshape(1, -1),
      wma.astype(bf), bma.reshape(1, -1),
      wmb.astype(bf), bmb.reshape(1, -1),
      wva.astype(bf), bva.reshape(1, -1),
      wvb.astype(bf), bvb.reshape(1, -1),
      eps)


# --------------------------------------------------------------------------- CSL stack kernel

def _csl_stack_kernel(*refs, n_run, hooked, n_layers_total, sblk, B, N):
    # Fused ConcatSquashLinear stack for `sblk` diffusion steps (one grid index):
    #   pre  = x @ W + b                              <- hooked activation (block._layer out)
    #   gate = sigmoid(ctx @ Wg + bg);  hb = ctx @ Wh   (computed in-kernel, B rows per step)
    #   out  = pre * gate + hb   (gate/hb broadcast over the N points in-register)
    #   out  = leaky_relu(out, 0.01) between layers
    # refs: x, ctx, then per layer l: w, b, (gw, gb, hw if l < n_run-1), then hooked outputs.
    pos = 0
    x_ref = refs[pos]; pos += 1
    ctx_ref = refs[pos]; pos += 1
    layers = []
    for l in range(n_run):
        w_ref, b_ref = refs[pos], refs[pos + 1]
        pos += 2
        if l < n_run - 1:
            gw_ref, gb_ref, hw_ref = refs[pos], refs[pos + 1], refs[pos + 2]
            pos += 3
        else:                    # deepest hooked layer's gated output is never consumed
            gw_ref = gb_ref = hw_ref = None
        layers.append((w_ref, b_ref, gw_ref, gb_ref, hw_ref))
    out_refs = refs[pos:]

    BN = B * N
    ctx_dim = ctx_ref.shape[-1]
    h = x_ref[...].reshape(sblk * BN, x_ref.shape[-1])        # (Sblk*BN, 3) f32 (K=3 layer)
    ctx = ctx_ref[...].reshape(sblk * B, ctx_dim)             # (Sblk*B, zdim+3) f32

    oi = 0
    for l, (w_ref, b_ref, gw_ref, gb_ref, hw_ref) in enumerate(layers):
        dout = w_ref.shape[1]
        pre = jnp.dot(h, w_ref[...], preferred_element_type=jnp.float32) + b_ref[...]
        if l in hooked:                                       # save_out_hook on block._layer
            out_refs[oi][...] = pre.reshape(sblk, BN, dout)
            oi += 1
        if gw_ref is not None:
            # Tiny (Sblk*B, ctx_dim) hyper matmuls — free filler under the main MXU pipeline.
            gate = jax.nn.sigmoid(
                jnp.dot(ctx, gw_ref[...], preferred_element_type=jnp.float32) + gb_ref[...])
            hbias = jnp.dot(ctx, hw_ref[...], preferred_element_type=jnp.float32)
            out = (pre.reshape(sblk, B, N, dout) * gate.reshape(sblk, B, 1, dout)
                   + hbias.reshape(sblk, B, 1, dout))
            if l < n_layers_total - 1:                        # F.leaky_relu(0.01) between layers
                out = jnp.where(out >= 0, out, 0.01 * out)
            h = out.reshape(sblk * BN, dout).astype(jnp.bfloat16)   # bf16 operand, f32 accum


def _pick_sblk(S, per_step_bytes, budget=16 << 20):
    """Largest divisor of S with 2x(double-buffered) per-iter bytes under `budget`
    while keeping the grid length >= 2 when S >= 2 (both v7x TensorCores busy)."""
    best = 1
    for d in range(1, S + 1):
        if S % d:
            continue
        if S // d < min(2, S):
            continue
        if 2 * d * per_step_bytes <= budget:
            best = d
    return best


def pointwise_net_hooked(x_noisy, ctx_emb, csl_params, blocks, n_layers_total):
    """x_noisy: (S, B*N, 3); ctx_emb: (S, B, zdim+3).
    Returns one (S, B*N, Dout_l) pre-activation array per hooked layer (ascending)."""
    S, BN, Cin = x_noisy.shape
    _, B, ctx_dim = ctx_emb.shape
    N = BN // B
    hooked = tuple(sorted(blocks))
    n_run = hooked[-1] + 1                      # layers past the deepest hook are unused
    douts = [csl_params[l]["w"].shape[1] for l in range(n_run)]

    out_bytes = sum(douts[l] for l in hooked) * 4
    per_step_bytes = BN * (Cin * 4 + out_bytes) + B * ctx_dim * 4
    sblk = _pick_sblk(S, per_step_bytes)
    grid = (S // sblk,)

    in_arrays = [x_noisy, ctx_emb]
    in_specs = [pl.BlockSpec((sblk, BN, Cin), lambda s: (s, 0, 0)),
                pl.BlockSpec((sblk, B, ctx_dim), lambda s: (s, 0, 0))]
    for l in range(n_run):
        lp = csl_params[l]
        din, dout = lp["w"].shape
        w = lp["w"] if l == 0 else lp["w"].astype(jnp.bfloat16)   # K=3 first layer stays f32
        in_arrays += [w, lp["b"].reshape(1, -1)]
        in_specs += [pl.BlockSpec((din, dout), lambda s: (0, 0)),
                     pl.BlockSpec((1, dout), lambda s: (0, 0))]
        if l < n_run - 1:
            in_arrays += [lp["gw"], lp["gb"].reshape(1, -1), lp["hw"]]
            in_specs += [pl.BlockSpec((ctx_dim, dout), lambda s: (0, 0)),
                         pl.BlockSpec((1, dout), lambda s: (0, 0)),
                         pl.BlockSpec((ctx_dim, dout), lambda s: (0, 0))]

    out_shape = tuple(jax.ShapeDtypeStruct((S, BN, douts[l]), jnp.float32) for l in hooked)
    out_specs = tuple(pl.BlockSpec((sblk, BN, douts[l]), lambda s: (s, 0, 0)) for l in hooked)

    return pl.pallas_call(
        functools.partial(_csl_stack_kernel, n_run=n_run, hooked=hooked,
                          n_layers_total=n_layers_total, sblk=sblk, B=B, N=N),
        out_shape=out_shape,
        grid=grid,
        in_specs=in_specs,
        out_specs=out_specs,
        # steps are independent -> "parallel" lets v7x shard them across its 2 TCs.
        compiler_params=pltpu.CompilerParams(dimension_semantics=("parallel",)),
    )(*in_arrays)


# --------------------------------------------------------------------------- params

def _init_linear(key, din, dout):
    kw, kb = jax.random.split(key)
    lim = 1.0 / (din ** 0.5)
    w = jax.random.uniform(kw, (din, dout), jnp.float32, -lim, lim)
    b = jax.random.uniform(kb, (dout,), jnp.float32, -lim, lim)
    return w, b


def init_params(key, zdim=16):
    keys = iter(jax.random.split(key, 64))
    params = {}
    # PointNet-style encoder (Conv1d k=1 chain) + fc_mu / fc_sigma heads.
    params["enc"] = [_init_linear(next(keys), 3, 32),
                     _init_linear(next(keys), 32, 64),
                     _init_linear(next(keys), 64, 128)]
    params["fc_m"] = [_init_linear(next(keys), 128, 64),
                      _init_linear(next(keys), 64, zdim)]
    params["fc_v"] = [_init_linear(next(keys), 128, 64),
                      _init_linear(next(keys), 64, zdim)]
    # PointwiseNet: ConcatSquashLinear stack, ctx dim = zdim + 3 (beta, sin, cos)
    ctx_dim = zdim + 3
    dims = [(3, 32), (32, 64), (64, 128), (128, 64), (64, 32), (32, 3)]
    csl = []
    for din, dout in dims:
        w, b = _init_linear(next(keys), din, dout)
        gw, gb = _init_linear(next(keys), ctx_dim, dout)
        hw, _ = _init_linear(next(keys), ctx_dim, dout)      # hyper_bias has no bias term
        csl.append({"w": w, "b": b, "gw": gw, "gb": gb, "hw": hw})
    params["csl"] = csl
    return params


def make_var_sched(num_steps=100, beta_1=1e-4, beta_T=0.02):
    betas = jnp.linspace(beta_1, beta_T, num_steps, dtype=jnp.float32)
    betas = jnp.concatenate([jnp.zeros((1,), jnp.float32), betas])  # padding, beta[0] = 0
    alphas = 1.0 - betas
    alpha_bars = jnp.cumprod(alphas)                                # matches torch.cumprod
    return betas, alpha_bars


# --------------------------------------------------------------------------- forward

@functools.partial(jax.jit, static_argnames=("steps", "blocks"))
def feature_extractor_forward(params, var_sched, x, *, steps, blocks, key):
    """Mirror of FeatureExtractorDDPM.forward.  Returns one stacked (S, B, N, Dout) array
    per hooked block (ascending block index); unpack outside the jit for the torch-ordered
    per-(step, block) activation list."""
    B, N, _ = x.shape
    S = len(steps)
    n_layers_total = len(params["csl"])
    hooked = tuple(sorted(blocks))

    x_flat = x.reshape(B * N, 3)
    zdim = params["fc_m"][1][0].shape[1]

    # --- encoder + fc heads + reparameterize_gaussian: one fused kernel
    k_eps, k_noise = jax.random.split(key)
    eps = jax.random.normal(k_eps, (B, zdim), jnp.float32)
    context = encoder_context(x_flat, eps, params["enc"], params["fc_m"], params["fc_v"],
                              B=B, N=N)                               # (B, zdim)

    # --- all diffusion steps batched into one kernel launch
    betas, alpha_bars = var_sched
    t = jnp.asarray(steps, jnp.int32)                                 # (S,)
    beta = betas[t]
    alpha_bar = alpha_bars[t]
    c0 = jnp.sqrt(alpha_bar)[:, None, None]
    c1 = jnp.sqrt(1.0 - alpha_bar)[:, None, None]
    e_rand = jax.random.normal(k_noise, (S, B * N, 3), jnp.float32)   # noise=None path
    x_noisy = c0 * x_flat[None] + c1 * e_rand                         # (S, B*N, 3)

    # ctx embedding: [beta, sin(beta), cos(beta), context]  -> (S, B, zdim+3)
    time_emb = jnp.stack([beta, jnp.sin(beta), jnp.cos(beta)], axis=-1)
    ctx_emb = jnp.concatenate(
        [jnp.broadcast_to(time_emb[:, None, :], (S, B, 3)),
         jnp.broadcast_to(context[None], (S, B, zdim))], axis=-1)

    pre_stacked = pointwise_net_hooked(x_noisy, ctx_emb, params["csl"],
                                       hooked, n_layers_total)

    return tuple(p.reshape(S, B, N, p.shape[-1]) for p in pre_stacked)


# --------------------------------------------------------------------------- main

if __name__ == "__main__":
    key = jax.random.PRNGKey(0)
    k_x, k_p, k_fwd = jax.random.split(key, 3)

    B, N = 2, 128                                  # batch of point clouds, 128 points, xyz
    x = jax.random.normal(k_x, (B, N, 3), jnp.float32)

    params = init_params(k_p, zdim=16)
    var_sched = make_var_sched(num_steps=100)

    steps = (10, 50)                               # kwargs['steps']
    blocks = (1, 2)                                # kwargs['blocks'] (hooked decoder layers)

    stacked = feature_extractor_forward(params, var_sched, x,
                                        steps=steps, blocks=blocks, key=k_fwd)
    stacked = jax.block_until_ready(stacked)

    # Torch hook ordering: per diffusion step t, hooked blocks in ascending index order.
    hooked = tuple(sorted(blocks))
    acts = [stacked[li][s] for s in range(len(steps)) for li in range(len(hooked))]

    expected = [(B, N, 64), (B, N, 128)] * len(steps)
    assert [tuple(a.shape) for a in acts] == expected, [a.shape for a in acts]
    assert all(a.dtype == jnp.float32 for a in acts)
    assert all(bool(jnp.all(jnp.isfinite(a))) for a in acts)
    print("KERNEL_OK")
</pallas_src>

<mosaic_0001>
module attributes {stable_mosaic.version = 11 : i64} {
  func.func @_encoder_kernel(%arg0: memref<256x3xf32, #tpu.memory_space<vmem>>, %arg1: memref<3x32xf32, #tpu.memory_space<vmem>>, %arg2: memref<1x32xf32, #tpu.memory_space<vmem>>, %arg3: memref<32x64xbf16, #tpu.memory_space<vmem>>, %arg4: memref<1x64xf32, #tpu.memory_space<vmem>>, %arg5: memref<64x128xbf16, #tpu.memory_space<vmem>>, %arg6: memref<1x128xf32, #tpu.memory_space<vmem>>, %arg7: memref<128x64xbf16, #tpu.memory_space<vmem>>, %arg8: memref<1x64xf32, #tpu.memory_space<vmem>>, %arg9: memref<64x16xbf16, #tpu.memory_space<vmem>>, %arg10: memref<1x16xf32, #tpu.memory_space<vmem>>, %arg11: memref<128x64xbf16, #tpu.memory_space<vmem>>, %arg12: memref<1x64xf32, #tpu.memory_space<vmem>>, %arg13: memref<64x16xbf16, #tpu.memory_space<vmem>>, %arg14: memref<1x16xf32, #tpu.memory_space<vmem>>, %arg15: memref<2x16xf32, #tpu.memory_space<vmem>>, %arg16: memref<2x16xf32, #tpu.memory_space<vmem>>) attributes {dimension_semantics = [], scalar_prefetch = 0 : i64, scratch_operands = 0 : i64, tpu.core_type = #tpu.core_type<tc>} {
    %c0 = arith.constant 0 : index
    %c0_0 = arith.constant 0 : index
    %0 = vector.load %arg0[%c0, %c0_0] : memref<256x3xf32, #tpu.memory_space<vmem>>, vector<256x3xf32>
    %c0_1 = arith.constant 0 : index
    %c0_2 = arith.constant 0 : index
    %1 = vector.load %arg1[%c0_1, %c0_2] : memref<3x32xf32, #tpu.memory_space<vmem>>, vector<3x32xf32>
    %cst = arith.constant dense<0.000000e+00> : vector<256x32xf32>
    %2 = tpu.matmul %0, %1, %cst {dimension_numbers = #tpu.dot_dimension_numbers<[1], [0], [0], [1], [0, 0, 1, 1], [], []>} : vector<256x3xf32>, vector<3x32xf32>, vector<256x32xf32> -> vector<256x32xf32>
    %c0_3 = arith.constant 0 : index
    %c0_4 = arith.constant 0 : index
    %3 = vector.load %arg2[%c0_3, %c0_4] : memref<1x32xf32, #tpu.memory_space<vmem>>, vector<1x32xf32>
    %4 = vector.broadcast %3 : vector<1x32xf32> to vector<256x32xf32>
    %5 = arith.addf %2, %4 : vector<256x32xf32>
    %cst_5 = arith.constant 0.000000e+00 : f32
    %6 = vector.broadcast %cst_5 : f32 to vector<256x32xf32>
    %7 = arith.maximumf %5, %6 : vector<256x32xf32>
    %8 = arith.truncf %7 : vector<256x32xf32> to vector<256x32xbf16>
    %c0_6 = arith.constant 0 : index
    %c0_7 = arith.constant 0 : index
    %9 = vector.load %arg3[%c0_6, %c0_7] : memref<32x64xbf16, #tpu.memory_space<vmem>>, vector<32x64xbf16>
    %cst_8 = arith.constant dense<0.000000e+00> : vector<256x64xf32>
    %10 = tpu.matmul %8, %9, %cst_8 {dimension_numbers = #tpu.dot_dimension_numbers<[1], [0], [0], [1], [0, 0, 1, 1], [], []>} : vector<256x32xbf16>, vector<32x64xbf16>, vector<256x64xf32> -> vector<256x64xf32>
    %c0_9 = arith.constant 0 : index
    %c0_10 = arith.constant 0 : index
    %11 = vector.load %arg4[%c0_9, %c0_10] : memref<1x64xf32, #tpu.memory_space<vmem>>, vector<1x64xf32>
    %12 = vector.broadcast %11 : vector<1x64xf32> to vector<256x64xf32>
    %13 = arith.addf %10, %12 : vector<256x64xf32>
    %cst_11 = arith.constant 0.000000e+00 : f32
    %14 = vector.broadcast %cst_11 : f32 to vector<256x64xf32>
    %15 = arith.maximumf %13, %14 : vector<256x64xf32>
    %16 = arith.truncf %15 : vector<256x64xf32> to vector<256x64xbf16>
    %c0_12 = arith.constant 0 : index
    %c0_13 = arith.constant 0 : index
    %17 = vector.load %arg5[%c0_12, %c0_13] : memref<64x128xbf16, #tpu.memory_space<vmem>>, vector<64x128xbf16>
    %cst_14 = arith.constant dense<0.000000e+00> : vector<256x128xf32>
    %18 = tpu.matmul %16, %17, %cst_14 {dimension_numbers = #tpu.dot_dimension_numbers<[1], [0], [0], [1], [0, 0, 1, 1], [], []>} : vector<256x64xbf16>, vector<64x128xbf16>, vector<256x128xf32> -> vector<256x128xf32>
    %c0_15 = arith.constant 0 : index
    %c0_16 = arith.constant 0 : index
    %19 = vector.load %arg6[%c0_15, %c0_16] : memref<1x128xf32, #tpu.memory_space<vmem>>, vector<1x128xf32>
    %20 = vector.broadcast %19 : vector<1x128xf32> to vector<256x128xf32>
    %21 = arith.addf %18, %20 : vector<256x128xf32>
    %22 = vector.shape_cast %21 : vector<256x128xf32> to vector<2x128x128xf32>
    %cst_17 = arith.constant dense<0xFF800000> : vector<2x128xf32>
    %23 = vector.multi_reduction <maximumf>, %22, %cst_17 [1] : vector<2x128x128xf32> to vector<2x128xf32>
    %24 = arith.truncf %23 : vector<2x128xf32> to vector<2x128xbf16>
    %c0_18 = arith.constant 0 : index
    %c0_19 = arith.constant 0 : index
    %25 = vector.load %arg7[%c0_18, %c0_19] : memref<128x64xbf16, #tpu.memory_space<vmem>>, vector<128x64xbf16>
    %cst_20 = arith.constant dense<0.000000e+00> : vector<2x64xf32>
    %26 = tpu.matmul %24, %25, %cst_20 {dimension_numbers = #tpu.dot_dimension_numbers<[1], [0], [0], [1], [0, 0, 1, 1], [], []>} : vector<2x128xbf16>, vector<128x64xbf16>, vector<2x64xf32> -> vector<2x64xf32>
    %c0_21 = arith.constant 0 : index
    %c0_22 = arith.constant 0 : index
    %27 = vector.load %arg8[%c0_21, %c0_22] : memref<1x64xf32, #tpu.memory_space<vmem>>, vector<1x64xf32>
    %28 = vector.broadcast %27 : vector<1x64xf32> to vector<2x64xf32>
    %29 = arith.addf %26, %28 : vector<2x64xf32>
    %cst_23 = arith.constant 0.000000e+00 : f32
    %30 = vector.broadcast %cst_23 : f32 to vector<2x64xf32>
    %31 = arith.maximumf %29, %30 : vector<2x64xf32>
    %32 = arith.truncf %31 : vector<2x64xf32> to vector<2x64xbf16>
    %c0_24 = arith.constant 0 : index
    %c0_25 = arith.constant 0 : index
    %33 = vector.load %arg9[%c0_24, %c0_25] : memref<64x16xbf16, #tpu.memory_space<vmem>>, vector<64x16xbf16>
    %cst_26 = arith.constant dense<0.000000e+00> : vector<2x16xf32>
    %34 = tpu.matmul %32, %33, %cst_26 {dimension_numbers = #tpu.dot_dimension_numbers<[1], [0], [0], [1], [0, 0, 1, 1], [], []>} : vector<2x64xbf16>, vector<64x16xbf16>, vector<2x16xf32> -> vector<2x16xf32>
    %c0_27 = arith.constant 0 : index
    %c0_28 = arith.constant 0 : index
    %35 = vector.load %arg10[%c0_27, %c0_28] : memref<1x16xf32, #tpu.memory_space<vmem>>, vector<1x16xf32>
    %36 = vector.broadcast %35 : vector<1x16xf32> to vector<2x16xf32>
    %37 = arith.addf %34, %36 : vector<2x16xf32>
    %c0_29 = arith.constant 0 : index
    %c0_30 = arith.constant 0 : index
    %38 = vector.load %arg11[%c0_29, %c0_30] : memref<128x64xbf16, #tpu.memory_space<vmem>>, vector<128x64xbf16>
    %cst_31 = arith.constant dense<0.000000e+00> : vector<2x64xf32>
    %39 = tpu.matmul %24, %38, %cst_31 {dimension_numbers = #tpu.dot_dimension_numbers<[1], [0], [0], [1], [0, 0, 1, 1], [], []>} : vector<2x128xbf16>, vector<128x64xbf16>, vector<2x64xf32> -> vector<2x64xf32>
    %c0_32 = arith.constant 0 : index
    %c0_33 = arith.constant 0 : index
    %40 = vector.load %arg12[%c0_32, %c0_33] : memref<1x64xf32, #tpu.memory_space<vmem>>, vector<1x64xf32>
    %41 = vector.broadcast %40 : vector<1x64xf32> to vector<2x64xf32>
    %42 = arith.addf %39, %41 : vector<2x64xf32>
    %cst_34 = arith.constant 0.000000e+00 : f32
    %43 = vector.broadcast %cst_34 : f32 to vector<2x64xf32>
    %44 = arith.maximumf %42, %43 : vector<2x64xf32>
    %45 = arith.truncf %44 : vector<2x64xf32> to vector<2x64xbf16>
    %c0_35 = arith.constant 0 : index
    %c0_36 = arith.constant 0 : index
    %46 = vector.load %arg13[%c0_35, %c0_36] : memref<64x16xbf16, #tpu.memory_space<vmem>>, vector<64x16xbf16>
    %cst_37 = arith.constant dense<0.000000e+00> : vector<2x16xf32>
    %47 = tpu.matmul %45, %46, %cst_37 {dimension_numbers = #tpu.dot_dimension_numbers<[1], [0], [0], [1], [0, 0, 1, 1], [], []>} : vector<2x64xbf16>, vector<64x16xbf16>, vector<2x16xf32> -> vector<2x16xf32>
    %c0_38 = arith.constant 0 : index
    %c0_39 = arith.constant 0 : index
    %48 = vector.load %arg14[%c0_38, %c0_39] : memref<1x16xf32, #tpu.memory_space<vmem>>, vector<1x16xf32>
    %49 = vector.broadcast %48 : vector<1x16xf32> to vector<2x16xf32>
    %50 = arith.addf %47, %49 : vector<2x16xf32>
    %cst_40 = arith.constant 5.000000e-01 : f32
    %51 = vector.broadcast %cst_40 : f32 to vector<2x16xf32>
    %52 = arith.mulf %51, %50 : vector<2x16xf32>
    %53 = math.exp %52 : vector<2x16xf32>
    %c0_41 = arith.constant 0 : index
    %c0_42 = arith.constant 0 : index
    %54 = vector.load %arg15[%c0_41, %c0_42] : memref<2x16xf32, #tpu.memory_space<vmem>>, vector<2x16xf32>
    %55 = arith.mulf %53, %54 : vector<2x16xf32>
    %56 = arith.addf %37, %55 : vector<2x16xf32>
    %c0_43 = arith.constant 0 : index
    %c0_44 = arith.constant 0 : index
    %57 = vector.load %arg16[%c0_43, %c0_44] : memref<2x16xf32, #tpu.memory_space<vmem>>, vector<2x16xf32>
    tpu.vector_store %arg16[%c0_43, %c0_44], %56 {strides = array<i32>} : memref<2x16xf32, #tpu.memory_space<vmem>>, vector<2x16xf32>,
    return
  }
}

module attributes {stable_mosaic.version = 11 : i64} {
  func.func @_csl_stack_kernel(%arg0: i32, %arg1: memref<1x256x3xf32, #tpu.memory_space<vmem>>, %arg2: memref<1x2x19xf32, #tpu.memory_space<vmem>>, %arg3: memref<3x32xf32, #tpu.memory_space<vmem>>, %arg4: memref<1x32xf32, #tpu.memory_space<vmem>>, %arg5: memref<19x32xf32, #tpu.memory_space<vmem>>, %arg6: memref<1x32xf32, #tpu.memory_space<vmem>>, %arg7: memref<19x32xf32, #tpu.memory_space<vmem>>, %arg8: memref<32x64xbf16, #tpu.memory_space<vmem>>, %arg9: memref<1x64xf32, #tpu.memory_space<vmem>>, %arg10: memref<19x64xf32, #tpu.memory_space<vmem>>, %arg11: memref<1x64xf32, #tpu.memory_space<vmem>>, %arg12: memref<19x64xf32, #tpu.memory_space<vmem>>, %arg13: memref<64x128xbf16, #tpu.memory_space<vmem>>, %arg14: memref<1x128xf32, #tpu.memory_space<vmem>>, %arg15: memref<1x256x64xf32, #tpu.memory_space<vmem>>, %arg16: memref<1x256x128xf32, #tpu.memory_space<vmem>>) attributes {dimension_semantics = [#tpu.dimension_semantics<parallel>], iteration_bounds = array<i64: 2>, scalar_prefetch = 0 : i64, scratch_operands = 0 : i64, tpu.core_type = #tpu.core_type<tc>, window_params = [{transform_indices = @transform_0, window_bounds = array<i64: 1, 256, 3>}, {transform_indices = @transform_1, window_bounds = array<i64: 1, 2, 19>}, {pipeline_mode = #tpu.pipeline_mode<synchronous>, transform_indices = @transform_2, window_bounds = array<i64: 3, 32>}, {pipeline_mode = #tpu.pipeline_mode<synchronous>, transform_indices = @transform_3, window_bounds = array<i64: 1, 32>}, {pipeline_mode = #tpu.pipeline_mode<synchronous>, transform_indices = @transform_4, window_bounds = array<i64: 19, 32>}, {pipeline_mode = #tpu.pipeline_mode<synchronous>, transform_indices = @transform_5, window_bounds = array<i64: 1, 32>}, {pipeline_mode = #tpu.pipeline_mode<synchronous>, transform_indices = @transform_6, window_bounds = array<i64: 19, 32>}, {pipeline_mode = #tpu.pipeline_mode<synchronous>, transform_indices = @transform_7, window_bounds = array<i64: 32, 64>}, {pipeline_mode = #tpu.pipeline_mode<synchronous>, transform_indices = @transform_8, window_bounds = array<i64: 1, 64>}, {pipeline_mode = #tpu.pipeline_mode<synchronous>, transform_indices = @transform_9, window_bounds = array<i64: 19, 64>}, {pipeline_mode = #tpu.pipeline_mode<synchronous>, transform_indices = @transform_10, window_bounds = array<i64: 1, 64>}, {pipeline_mode = #tpu.pipeline_mode<synchronous>, transform_indices = @transform_11, window_bounds = array<i64: 19, 64>}, {pipeline_mode = #tpu.pipeline_mode<synchronous>, transform_indices = @transform_12, window_bounds = array<i64: 64, 128>}, {pipeline_mode = #tpu.pipeline_mode<synchronous>, transform_indices = @transform_13, window_bounds = array<i64: 1, 128>}, {transform_indices = @transform_14, window_bounds = array<i64: 1, 256, 64>}, {transform_indices = @transform_15, window_bounds = array<i64: 1, 256, 128>}]} {
    %c0 = arith.constant 0 : index
    %c0_0 = arith.constant 0 : index
    %c0_1 = arith.constant 0 : index
    %0 = vector.load %arg1[%c0, %c0_0, %c0_1] : memref<1x256x3xf32, #tpu.memory_space<vmem>>, vector<1x256x3xf32>
    %1 = vector.shape_cast %0 : vector<1x256x3xf32> to vector<256x3xf32>
    %c0_2 = arith.constant 0 : index
    %c0_3 = arith.constant 0 : index
    %c0_4 = arith.constant 0 : index
    %2 = vector.load %arg2[%c0_2, %c0_3, %c0_4] : memref<1x2x19xf32, #tpu.memory_space<vmem>>, vector<1x2x19xf32>
    %3 = vector.shape_cast %2 : vector<1x2x19xf32> to vector<2x19xf32>
    %c0_5 = arith.constant 0 : index
    %c0_6 = arith.constant 0 : index
    %4 = vector.load %arg3[%c0_5, %c0_6] : memref<3x32xf32, #tpu.memory_space<vmem>>, vector<3x32xf32>
    %cst = arith.constant dense<0.000000e+00> : vector<256x32xf32>
    %5 = tpu.matmul %1, %4, %cst {dimension_numbers = #tpu.dot_dimension_numbers<[1], [0], [0], [1], [0, 0, 1, 1], [], []>} : vector<256x3xf32>, vector<3x32xf32>, vector<256x32xf32> -> vector<256x32xf32>
    %c0_7 = arith.constant 0 : index
    %c0_8 = arith.constant 0 : index
    %6 = vector.load %arg4[%c0_7, %c0_8] : memref<1x32xf32, #tpu.memory_space<vmem>>, vector<1x32xf32>
    %7 = vector.broadcast %6 : vector<1x32xf32> to vector<256x32xf32>
    %8 = arith.addf %5, %7 : vector<256x32xf32>
    %c0_9 = arith.constant 0 : index
    %c0_10 = arith.constant 0 : index
    %9 = vector.load %arg5[%c0_9, %c0_10] : memref<19x32xf32, #tpu.memory_space<vmem>>, vector<19x32xf32>
    %cst_11 = arith.constant dense<0.000000e+00> : vector<2x32xf32>
    %10 = tpu.matmul %3, %9, %cst_11 {dimension_numbers = #tpu.dot_dimension_numbers<[1], [0], [0], [1], [0, 0, 1, 1], [], []>} : vector<2x19xf32>, vector<19x32xf32>, vector<2x32xf32> -> vector<2x32xf32>
    %c0_12 = arith.constant 0 : index
    %c0_13 = arith.constant 0 : index
    %11 = vector.load %arg6[%c0_12, %c0_13] : memref<1x32xf32, #tpu.memory_space<vmem>>, vector<1x32xf32>
    %12 = vector.broadcast %11 : vector<1x32xf32> to vector<2x32xf32>
    %13 = arith.addf %10, %12 : vector<2x32xf32>
    %14 = arith.negf %13 : vector<2x32xf32>
    %15 = math.exp %14 : vector<2x32xf32>
    %cst_14 = arith.constant 1.000000e+00 : f32
    %16 = vector.broadcast %cst_14 : f32 to vector<2x32xf32>
    %17 = arith.addf %16, %15 : vector<2x32xf32>
    %18 = arith.divf %16, %17 : vector<2x32xf32>
    %c0_15 = arith.constant 0 : index
    %c0_16 = arith.constant 0 : index
    %19 = vector.load %arg7[%c0_15, %c0_16] : memref<19x32xf32, #tpu.memory_space<vmem>>, vector<19x32xf32>
    %cst_17 = arith.constant dense<0.000000e+00> : vector<2x32xf32>
    %20 = tpu.matmul %3, %19, %cst_17 {dimension_numbers = #tpu.dot_dimension_numbers<[1], [0], [0], [1], [0, 0, 1, 1], [], []>} : vector<2x19xf32>, vector<19x32xf32>, vector<2x32xf32> -> vector<2x32xf32>
    %21 = vector.shape_cast %8 : vector<256x32xf32> to vector<1x2x128x32xf32>
    %22 = vector.shape_cast %18 : vector<2x32xf32> to vector<1x2x1x32xf32>
    %23 = vector.broadcast %22 : vector<1x2x1x32xf32> to vector<1x2x128x32xf32>
    %24 = arith.mulf %21, %23 : vector<1x2x128x32xf32>
    %25 = vector.shape_cast %20 : vector<2x32xf32> to vector<1x2x1x32xf32>
    %26 = vector.broadcast %25 : vector<1x2x1x32xf32> to vector<1x2x128x32xf32>
    %27 = arith.addf %24, %26 : vector<1x2x128x32xf32>
    %cst_18 = arith.constant 0.000000e+00 : f32
    %28 = vector.broadcast %cst_18 : f32 to vector<1x2x128x32xf32>
    %29 = arith.cmpf oge, %27, %28 : vector<1x2x128x32xf32>
    %cst_19 = arith.constant 0.00999999977 : f32
    %30 = vector.broadcast %cst_19 : f32 to vector<1x2x128x32xf32>
    %31 = arith.mulf %30, %27 : vector<1x2x128x32xf32>
    %32 = arith.select %29, %27, %31 : vector<1x2x128x32xi1>, vector<1x2x128x32xf32>
    %33 = vector.shape_cast %32 : vector<1x2x128x32xf32> to vector<256x32xf32>
    %34 = arith.truncf %33 : vector<256x32xf32> to vector<256x32xbf16>
    %c0_20 = arith.constant 0 : index
    %c0_21 = arith.constant 0 : index
    %35 = vector.load %arg8[%c0_20, %c0_21] : memref<32x64xbf16, #tpu.memory_space<vmem>>, vector<32x64xbf16>
    %cst_22 = arith.constant dense<0.000000e+00> : vector<256x64xf32>
    %36 = tpu.matmul %34, %35, %cst_22 {dimension_numbers = #tpu.dot_dimension_numbers<[1], [0], [0], [1], [0, 0, 1, 1], [], []>} : vector<256x32xbf16>, vector<32x64xbf16>, vector<256x64xf32> -> vector<256x64xf32>
    %c0_23 = arith.constant 0 : index
    %c0_24 = arith.constant 0 : index
    %37 = vector.load %arg9[%c0_23, %c0_24] : memref<1x64xf32, #tpu.memory_space<vmem>>, vector<1x64xf32>
    %38 = vector.broadcast %37 : vector<1x64xf32> to vector<256x64xf32>
    %39 = arith.addf %36, %38 : vector<256x64xf32>
    %40 = vector.shape_cast %39 : vector<256x64xf32> to vector<1x256x64xf32>
    %c0_25 = arith.constant 0 : index
    %c0_26 = arith.constant 0 : index
    %c0_27 = arith.constant 0 : index
    %41 = vector.load %arg15[%c0_25, %c0_26, %c0_27] : memref<1x256x64xf32, #tpu.memory_space<vmem>>, vector<1x256x64xf32>
    tpu.vector_store %arg15[%c0_25, %c0_26, %c0_27], %40 {strides = array<i32>} : memref<1x256x64xf32, #tpu.memory_space<vmem>>, vector<1x256x64xf32>,
    %c0_28 = arith.constant 0 : index
    %c0_29 = arith.constant 0 : index
    %42 = vector.load %arg10[%c0_28, %c0_29] : memref<19x64xf32, #tpu.memory_space<vmem>>, vector<19x64xf32>
    %cst_30 = arith.constant dense<0.000000e+00> : vector<2x64xf32>
    %43 = tpu.matmul %3, %42, %cst_30 {dimension_numbers = #tpu.dot_dimension_numbers<[1], [0], [0], [1], [0, 0, 1, 1], [], []>} : vector<2x19xf32>, vector<19x64xf32>, vector<2x64xf32> -> vector<2x64xf32>
    %c0_31 = arith.constant 0 : index
    %c0_32 = arith.constant 0 : index
    %44 = vector.load %arg11[%c0_31, %c0_32] : memref<1x64xf32, #tpu.memory_space<vmem>>, vector<1x64xf32>
    %45 = vector.broadcast %44 : vector<1x64xf32> to vector<2x64xf32>
    %46 = arith.addf %43, %45 : vector<2x64xf32>
    %47 = arith.negf %46 : vector<2x64xf32>
    %48 = math.exp %47 : vector<2x64xf32>
    %cst_33 = arith.constant 1.000000e+00 : f32
    %49 = vector.broadcast %cst_33 : f32 to vector<2x64xf32>
    %50 = arith.addf %49, %48 : vector<2x64xf32>
    %51 = arith.divf %49, %50 : vector<2x64xf32>
    %c0_34 = arith.constant 0 : index
    %c0_35 = arith.constant 0 : index
    %52 = vector.load %arg12[%c0_34, %c0_35] : memref<19x64xf32, #tpu.memory_space<vmem>>, vector<19x64xf32>
    %cst_36 = arith.constant dense<0.000000e+00> : vector<2x64xf32>
    %53 = tpu.matmul %3, %52, %cst_36 {dimension_numbers = #tpu.dot_dimension_numbers<[1], [0], [0], [1], [0, 0, 1, 1], [], []>} : vector<2x19xf32>, vector<19x64xf32>, vector<2x64xf32> -> vector<2x64xf32>
    %54 = vector.shape_cast %39 : vector<256x64xf32> to vector<1x2x128x64xf32>
    %55 = vector.shape_cast %51 : vector<2x64xf32> to vector<1x2x1x64xf32>
    %56 = vector.broadcast %55 : vector<1x2x1x64xf32> to vector<1x2x128x64xf32>
    %57 = arith.mulf %54, %56 : vector<1x2x128x64xf32>
    %58 = vector.shape_cast %53 : vector<2x64xf32> to vector<1x2x1x64xf32>
    %59 = vector.broadcast %58 : vector<1x2x1x64xf32> to vector<1x2x128x64xf32>
    %60 = arith.addf %57, %59 : vector<1x2x128x64xf32>
    %cst_37 = arith.constant 0.000000e+00 : f32
    %61 = vector.broadcast %cst_37 : f32 to vector<1x2x128x64xf32>
    %62 = arith.cmpf oge, %60, %61 : vector<1x2x128x64xf32>
    %cst_38 = arith.constant 0.00999999977 : f32
    %63 = vector.broadcast %cst_38 : f32 to vector<1x2x128x64xf32>
    %64 = arith.mulf %63, %60 : vector<1x2x128x64xf32>
    %65 = arith.select %62, %60, %64 : vector<1x2x128x64xi1>, vector<1x2x128x64xf32>
    %66 = vector.shape_cast %65 : vector<1x2x128x64xf32> to vector<256x64xf32>
    %67 = arith.truncf %66 : vector<256x64xf32> to vector<256x64xbf16>
    %c0_39 = arith.constant 0 : index
    %c0_40 = arith.constant 0 : index
    %68 = vector.load %arg13[%c0_39, %c0_40] : memref<64x128xbf16, #tpu.memory_space<vmem>>, vector<64x128xbf16>
    %cst_41 = arith.constant dense<0.000000e+00> : vector<256x128xf32>
    %69 = tpu.matmul %67, %68, %cst_41 {dimension_numbers = #tpu.dot_dimension_numbers<[1], [0], [0], [1], [0, 0, 1, 1], [], []>} : vector<256x64xbf16>, vector<64x128xbf16>, vector<256x128xf32> -> vector<256x128xf32>
    %c0_42 = arith.constant 0 : index
    %c0_43 = arith.constant 0 : index
    %70 = vector.load %arg14[%c0_42, %c0_43] : memref<1x128xf32, #tpu.memory_space<vmem>>, vector<1x128xf32>
    %71 = vector.broadcast %70 : vector<1x128xf32> to vector<256x128xf32>
    %72 = arith.addf %69, %71 : vector<256x128xf32>
    %73 = vector.shape_cast %72 : vector<256x128xf32> to vector<1x256x128xf32>
    %c0_44 = arith.constant 0 : index
    %c0_45 = arith.constant 0 : index
    %c0_46 = arith.constant 0 : index
    %74 = vector.load %arg16[%c0_44, %c0_45, %c0_46] : memref<1x256x128xf32, #tpu.memory_space<vmem>>, vector<1x256x128xf32>
    tpu.vector_store %arg16[%c0_44, %c0_45, %c0_46], %73 {strides = array<i32>} : memref<1x256x128xf32, #tpu.memory_space<vmem>>, vector<1x256x128xf32>,
    return
  }
  func.func @transform_0(%arg0: i32) -> (i32, i32, i32) {
    %c0_i32 = arith.constant 0 : i32
    %c0_i32_0 = arith.constant 0 : i32
    %c0_i32_1 = arith.constant 0 : i32
    return %arg0, %c0_i32, %c0_i32_0 : i32, i32, i32
  }
  func.func @transform_1(%arg0: i32) -> (i32, i32, i32) {
    %c0_i32 = arith.constant 0 : i32
    %c0_i32_0 = arith.constant 0 : i32
    %c0_i32_1 = arith.constant 0 : i32
    return %arg0, %c0_i32, %c0_i32_0 : i32, i32, i32
  }
  func.func @transform_2(%arg0: i32) -> (i32, i32) {
    %c0_i32 = arith.constant 0 : i32
    %c0_i32_0 = arith.constant 0 : i32
    %c0_i32_1 = arith.constant 0 : i32
    return %c0_i32, %c0_i32_0 : i32, i32
  }
  func.func @transform_3(%arg0: i32) -> (i32, i32) {
    %c0_i32 = arith.constant 0 : i32
    %c0_i32_0 = arith.constant 0 : i32
    %c0_i32_1 = arith.constant 0 : i32
    return %c0_i32, %c0_i32_0 : i32, i32
  }
  func.func @transform_4(%arg0: i32) -> (i32, i32) {
    %c0_i32 = arith.constant 0 : i32
    %c0_i32_0 = arith.constant 0 : i32
    %c0_i32_1 = arith.constant 0 : i32
    return %c0_i32, %c0_i32_0 : i32, i32
  }
  func.func @transform_5(%arg0: i32) -> (i32, i32) {
    %c0_i32 = arith.constant 0 : i32
    %c0_i32_0 = arith.constant 0 : i32
    %c0_i32_1 = arith.constant 0 : i32
    return %c0_i32, %c0_i32_0 : i32, i32
  }
  func.func @transform_6(%arg0: i32) -> (i32, i32) {
    %c0_i32 = arith.constant 0 : i32
    %c0_i32_0 = arith.constant 0 : i32
    %c0_i32_1 = arith.constant 0 : i32
    return %c0_i32, %c0_i32_0 : i32, i32
  }
  func.func @transform_7(%arg0: i32) -> (i32, i32) {
    %c0_i32 = arith.constant 0 : i32
    %c0_i32_0 = arith.constant 0 : i32
    %c0_i32_1 = arith.constant 0 : i32
    return %c0_i32, %c0_i32_0 : i32, i32
  }
  func.func @transform_8(%arg0: i32) -> (i32, i32) {
    %c0_i32 = arith.constant 0 : i32
    %c0_i32_0 = arith.constant 0 : i32
    %c0_i32_1 = arith.constant 0 : i32
    return %c0_i32, %c0_i32_0 : i32, i32
  }
  func.func @transform_9(%arg0: i32) -> (i32, i32) {
    %c0_i32 = arith.constant 0 : i32
    %c0_i32_0 = arith.constant 0 : i32
    %c0_i32_1 = arith.constant 0 : i32
    return %c0_i32, %c0_i32_0 : i32, i32
  }
  func.func @transform_10(%arg0: i32) -> (i32, i32) {
    %c0_i32 = arith.constant 0 : i32
    %c0_i32_0 = arith.constant 0 : i32
    %c0_i32_1 = arith.constant 0 : i32
    return %c0_i32, %c0_i32_0 : i32, i32
  }
  func.func @transform_11(%arg0: i32) -> (i32, i32) {
    %c0_i32 = arith.constant 0 : i32
    %c0_i32_0 = arith.constant 0 : i32
    %c0_i32_1 = arith.constant 0 : i32
    return %c0_i32, %c0_i32_0 : i32, i32
  }
  func.func @transform_12(%arg0: i32) -> (i32, i32) {
    %c0_i32 = arith.constant 0 : i32
    %c0_i32_0 = arith.constant 0 : i32
    %c0_i32_1 = arith.constant 0 : i32
    return %c0_i32, %c0_i32_0 : i32, i32
  }
  func.func @transform_13(%arg0: i32) -> (i32, i32) {
    %c0_i32 = arith.constant 0 : i32
    %c0_i32_0 = arith.constant 0 : i32
    %c0_i32_1 = arith.constant 0 : i32
    return %c0_i32, %c0_i32_0 : i32, i32
  }
  func.func @transform_14(%arg0: i32) -> (i32, i32, i32) {
    %c0_i32 = arith.constant 0 : i32
    %c0_i32_0 = arith.constant 0 : i32
    %c0_i32_1 = arith.constant 0 : i32
    return %arg0, %c0_i32, %c0_i32_0 : i32, i32, i32
  }
  func.func @transform_15(%arg0: i32) -> (i32, i32, i32) {
    %c0_i32 = arith.constant 0 : i32
    %c0_i32_0 = arith.constant 0 : i32
    %c0_i32_1 = arith.constant 0 : i32
    return %arg0, %c0_i32, %c0_i32_0 : i32, i32, i32
  }
}

</mosaic_0001>

<bundles_post_ra>
// kernel: feature_extractor_forward.4
= control target key start
LH: loop header
LB: loop body
LE: loop exit
PB: predicated region body
PF: predicated region fallthrough
CT: control target
= control target key end

     0   :  { %vm191_vm0 = vcmask 1042432   ;;  %vm94_vm1 = vcmask 23552   ;;  %vm491_vm2 = vcmask 261120   ;;  %vm788_vm3 = vcmask 523264   ;;  %s2390_s1 = inlined_call_operand.vmem [shape: f32[3,32], index: 1, kind: input, shape index: {}]   ;;  %s2391_s0 = inlined_call_operand.vmem [shape: f32[256,3], index: 0, kind: input, shape index: {}]   ;;  %s2392_s3 = inlined_call_operand.vmem [shape: bf16[32,64], index: 3, kind: input, shape index: {}]   ;;  %s2393_s5 = inlined_call_operand.vmem [shape: bf16[64,128], index: 5, kind: input, shape index: {}]   ;;  %s2394_s2 = inlined_call_operand.vmem [shape: f32[1,32], index: 2, kind: input, shape index: {}]   ;;  %s2395_s4 = inlined_call_operand.vmem [shape: f32[1,64], index: 4, kind: input, shape index: {}]   ;;  %s2396_s7 = inlined_call_operand.vmem [shape: bf16[128,64], index: 7, kind: input, shape index: {}]   ;;  %s2397_s9 = inlined_call_operand.vmem [shape: bf16[64,16], index: 9, kind: input, shape index: {}]   ;;  %s2398_s6 = inlined_call_operand.vmem [shape: f32[1,128], index: 6, kind: input, shape index: {}]   ;;  %s2399_s11 = inlined_call_operand.vmem [shape: bf16[128,64], index: 11, kind: input, shape index: {}]   ;;  %s2400_s13 = inlined_call_operand.vmem [shape: bf16[64,16], index: 13, kind: input, shape index: {}]   ;;  %s2401_s8 = inlined_call_operand.vmem [shape: f32[1,64], index: 8, kind: input, shape index: {}]   ;;  %s2402_s12 = inlined_call_operand.vmem [shape: f32[1,64], index: 12, kind: input, shape index: {}]   ;;  %s2403_s14 = inlined_call_operand.vmem [shape: f32[1,16], index: 14, kind: input, shape index: {}]   ;;  %s2404_s10 = inlined_call_operand.vmem [shape: f32[1,16], index: 10, kind: input, shape index: {}]   ;;  %s2405_s15 = inlined_call_operand.vmem [shape: f32[2,16], index: 15, kind: input, shape index: {}]   ;;  %s2406_s16 = inlined_call_operand.vmem [shape: f32[2,16], index: 16, kind: output, shape index: {}]  }
   0x1   :  { %2407 = sst [smem:[#allocation2_spill]] %s2390_s1  ;;  %v54_v1 = vld [vmem:[%s2391_s0] sm:$0xff]  ;;  %v55_v2 = vld [vmem:[%s2391_s0 + $0x8] sm:$0xff]  ;;  %v56_v3 = vld [vmem:[%s2391_s0 + $0x10] sm:$0xff]  ;;  %vm1882_vm4 = vmmov 0   ;;  %vm1069_vm5 = vcmask 1041409  }
   0x2   :  { %s2408_s23 = sld [smem:[#allocation2_spill]]  ;;  %1657 = vmatprep.mubr.msk.f32.mxu0 %vm94_vm1, %v54_v1  ;;  %v57_v4 = vld [vmem:[%s2391_s0 + $0x18] sm:$0xff]  ;;  %v58_v5 = vld [vmem:[%s2391_s0 + $0x20] sm:$0xff]  ;;  %v59_v6 = vld [vmem:[%s2391_s0 + $0x28] sm:$0xff]  ;;  %vm1446_vm6 = vcmask 123904  }
   0x3   :  { %v60_v7 = vld [vmem:[%s2391_s0 + $0x30] sm:$0xff]  ;;  %v82_v8 = vld [vmem:[%s2391_s0 + $0xe0] sm:$0xff]  ;;  %v83_v9 = vld [vmem:[%s2391_s0 + $0xe8] sm:$0xff] }
   0x4   :  { %1699 = vmatprep.mubr.msk.f32.mxu1 %vm94_vm1, %v82_v8  ;;  %v84_v10 = vld [vmem:[%s2391_s0 + $0xf0] sm:$0xff]  ;;  %v61_v11 = vld [vmem:[%s2391_s0 + $0x38] sm:$0xff]  ;;  %v62_v13 = vld [vmem:[%s2391_s0 + $0x40] sm:$0xff] }
   0x5   :  { %v85_v12 = vld [vmem:[%s2391_s0 + $0xf8] sm:$0xff]  ;;  %v63_v14 = vld [vmem:[%s2391_s0 + $0x48] sm:$0xff]  ;;  %v64_v15 = vld [vmem:[%s2391_s0 + $0x50] sm:$0xff] }
   0x6   :  { %v65_v16 = vld [vmem:[%s2391_s0 + $0x58] sm:$0xff]  ;;  %v66_v17 = vld [vmem:[%s2391_s0 + $0x60] sm:$0xff]  ;;  %v67_v18 = vld [vmem:[%s2391_s0 + $0x68] sm:$0xff] }
   0x7   :  { %v68_v19 = vld [vmem:[%s2391_s0 + $0x70] sm:$0xff]  ;;  %v69_v20 = vld [vmem:[%s2391_s0 + $0x78] sm:$0xff]  ;;  %v70_v21 = vld [vmem:[%s2391_s0 + $0x80] sm:$0xff] }
   0x8   :  { %v86_v0 = vld [vmem:[%s2408_s23] sm:$0x7]  ;;  %v71_v22 = vld [vmem:[%s2391_s0 + $0x88] sm:$0xff]  ;;  %v72_v23 = vld [vmem:[%s2391_s0 + $0x90] sm:$0xff] }
   0x9   :  { %1655 = vmatprep.subr.msk.mxu0 %vm191_vm0, %v86_v0  ;;  %1845 = vmatprep.subr.msk.mxu1 %vm191_vm0, %v86_v0  ;;  %v73_v24 = vld [vmem:[%s2391_s0 + $0x98] sm:$0xff]  ;;  %v74_v25 = vld [vmem:[%s2391_s0 + $0xa0] sm:$0xff]  ;;  %v75_v26 = vld [vmem:[%s2391_s0 + $0xa8] sm:$0xff] }
   0xa   :  { %1656 = vmatpush3.msk.msra.mxu0 %vm191_vm0, %v86_v0  ;;  %1846 = vmatpush3.msk.msra.mxu1 %vm191_vm0, %v86_v0  ;;  %v76_v27 = vld [vmem:[%s2391_s0 + $0xb0] sm:$0xff]  ;;  %v77_v28 = vld [vmem:[%s2391_s0 + $0xb8] sm:$0xff]  ;;  %v78_v29 = vld [vmem:[%s2391_s0 + $0xc0] sm:$0xff] }
   0xb   :  { %1658 = vmatmul.mubr.msk.f32.vlgmr.msra.gmra.mrb[0].mxu0 %vm94_vm1, %v55_v2  ;;  %1700 = vmatmul.mubr.msk.f32.vlgmr.msra.gmra.mrb[0].mxu1 %vm94_vm1, %v83_v9  ;;  %v79_v30 = vld [vmem:[%s2391_s0 + $0xc8] sm:$0xff]  ;;  %v80_v31 = vld [vmem:[%s2391_s0 + $0xd0] sm:$0xff]  ;;  %v81_v32 = vld [vmem:[%s2391_s0 + $0xd8] sm:$0xff] }
   0xc   :  { %1660 = vmatprep.mubr.msk.f32.mxu0 %vm94_vm1, %v56_v3  ;;  %1702 = vmatprep.mubr.msk.f32.mxu1 %vm94_vm1, %v84_v10  ;;  %v1849_v33 = vld [vmem:[%s2392_s3] sm:$0xff]   ;;  %v1850_v34 = vld [vmem:[%s2392_s3 + $0x8] sm:$0xff]   ;;  %v1853_v37 = vld [vmem:[%s2393_s5 + $0x10] sm:$0xff]  }
   0xd   :  { %1705 = vmatprep.subr.bf16.mxu1 %v1849_v33  ;;  %v1851_v35 = vld [vmem:[%s2393_s5] sm:$0xff]   ;;  %v1852_v36 = vld [vmem:[%s2393_s5 + $0x8] sm:$0xff]   ;;  %v1854_v38 = vld [vmem:[%s2393_s5 + $0x18] sm:$0xff]  }
   0xe   :  { %1706 = vmatpush3.bf16.msra.mxu1 %v1849_v33  ;;  %1741 = vmatprep.subr.bf16.mxu0 %v1851_v35  ;;  %v2120_v39 = vld [vmem:[%s2394_s2] ss:$0 sm:$0xff] }
   0xf   :  { %1661 = vmatmul.mubr.msk.f32.gmra.mrb[2].mxu0 %vm94_vm1, %v57_v4  ;;  %1703 = vmatmul.mubr.msk.f32.gmra.mrb[2].mxu1 %vm94_vm1, %v85_v12 }
  0x10   :  { %1663 = vmatprep.mubr.msk.f32.mxu0 %vm94_vm1, %v58_v5  ;;  %1707 = vmatprep.subr.bf16.mxu1 %v1850_v34 }
  0x11   :  { %1742 = vmatpush3.bf16.msra.mxu0 %v1851_v35 }
  0x12   :  { %1708 = vmatpush3.bf16.msra.mxu1 %v1850_v34  ;;  %1743 = vmatprep.subr.bf16.mxu0 %v1852_v36 }
  0x13   :  { %1664 = vmatmul.mubr.msk.f32.gmra.mrb[4].mxu0 %vm94_vm1, %v59_v6 }
  0x14   :  { %1666 = vmatprep.mubr.msk.f32.mxu0 %vm94_vm1, %v60_v7 }
  0x15   :  { %1744 = vmatpush3.bf16.msra.mxu0 %v1852_v36 }
  0x16   :  { %1745 = vmatprep.subr.bf16.mxu0 %v1853_v37 }
  0x17   :  { %1667 = vmatmul.mubr.msk.f32.gmra.mrb[6].mxu0 %vm94_vm1, %v61_v11 }
  0x18   :  { %1669 = vmatprep.mubr.msk.f32.mxu0 %vm94_vm1, %v62_v13 }
  0x19   :  { %1746 = vmatpush3.bf16.msra.mxu0 %v1853_v37 }
  0x1a   :  { %1747 = vmatprep.subr.bf16.mxu0 %v1854_v38 }
  0x1b   :  { %1670 = vmatmul.mubr.msk.f32.gmra.mrb[8].mxu0 %vm94_vm1, %v63_v14 }
  0x1c   :  { %1672 = vmatprep.mubr.msk.f32.mxu0 %vm94_vm1, %v64_v15 }
  0x1d   :  { %1748 = vmatpush3.bf16.msra.mxu0 %v1854_v38 }
  0x1f   :  { %1673 = vmatmul.mubr.msk.f32.gmra.mrb[10].mxu0 %vm94_vm1, %v65_v16 }
  0x20   :  { %1675 = vmatprep.mubr.msk.f32.mxu0 %vm94_vm1, %v66_v17 }
  0x23   :  { %1676 = vmatmul.mubr.msk.f32.gmra.mrb[12].mxu0 %vm94_vm1, %v67_v18 }
  0x24   :  { %1678 = vmatprep.mubr.msk.f32.mxu0 %vm94_vm1, %v68_v19 }
  0x27   :  { %1679 = vmatmul.mubr.msk.f32.gmra.mrb[14].mxu0 %vm94_vm1, %v69_v20 }
  0x28   :  { %1681 = vmatprep.mubr.msk.f32.mxu0 %vm94_vm1, %v70_v21 }
  0x2b   :  { %1682 = vmatmul.mubr.msk.f32.gmra.mrb[16].mxu0 %vm94_vm1, %v71_v22 }
  0x2c   :  { %1684 = vmatprep.mubr.msk.f32.mxu0 %vm94_vm1, %v72_v23 }
  0x2f   :  { %1685 = vmatmul.mubr.msk.f32.gmra.mrb[18].mxu0 %vm94_vm1, %v73_v24 }
  0x30   :  { %1687 = vmatprep.mubr.msk.f32.mxu0 %vm94_vm1, %v74_v25 }
  0x33   :  { %1688 = vmatmul.mubr.msk.f32.gmra.mrb[20].mxu0 %vm94_vm1, %v75_v26 }
  0x34   :  { %1690 = vmatprep.mubr.msk.f32.mxu0 %vm94_vm1, %v76_v27 }
  0x37   :  { %1691 = vmatmul.mubr.msk.f32.gmra.mrb[22].mxu0 %vm94_vm1, %v77_v28 }
  0x38   :  { %1693 = vmatprep.mubr.msk.f32.mxu0 %vm94_vm1, %v78_v29 }
  0x3b   :  { %1694 = vmatmul.mubr.msk.f32.gmra.mrb[24].mxu0 %vm94_vm1, %v79_v30 }
  0x3c   :  { %1696 = vmatprep.mubr.msk.f32.mxu0 %vm94_vm1, %v80_v31 }
  0x3f   :  { %1697 = vmatmul.mubr.msk.f32.gmra.mrb[26].mxu0 %vm94_vm1, %v81_v32 }
  0xde   :  { %v1659_v40 = vpop.f32.mrb[0].mxu0  ;;  %v1701_v54 = vpop.f32.mrb[0].mxu1 }
  0xdf   :  { %v267_v41 = vadd.f32 %v1659_v40, %v2120_v39  ;;  %v261_v42 = vpop.f32.mrb[1].mxu0  ;;  %v407_v57 = vadd.f32 %v1701_v54, %v2120_v39  ;;  %v401_v58 = vpop.f32.mrb[1].mxu1 }
  0xe0   :  { %v262_v43 = vadd.f32 %v2120_v39, %v261_v42  ;;  %v402_v61 = vadd.f32 %v2120_v39, %v401_v58 }
  0xe1   :  { %v421_v44 = vmax.f32 %v267_v41, 0.0  ;;  %v449_v63 = vmax.f32 %v407_v57, 0.0 }
  0xe2   :  { %v420_v45 = vmax.f32 %v262_v43, 0.0  ;;  %v1662_v46 = vpop.f32.mrb[2].mxu0  ;;  %v448_v2 = vmax.f32 %v402_v61, 0.0  ;;  %v1704_v3 = vpop.f32.mrb[2].mxu1 }
  0xe3   :  { %v277_v47 = vadd.f32 %v1662_v46, %v2120_v39  ;;  %v271_v48 = vpop.f32.mrb[3].mxu0  ;;  %v417_v6 = vadd.f32 %v1704_v3, %v2120_v39  ;;  %v411_v7 = vpop.f32.mrb[3].mxu1 }
  0xe4   :  { %v452_v49 = vpack.c.bf16 %v421_v44, %v420_v45  ;;  %v272_v50 = vadd.f32 %v2120_v39, %v271_v48  ;;  %v2135_v10 = vpack.c.bf16 %v449_v63, %v448_v2  ;;  %v412_v11 = vadd.f32 %v2120_v39, %v411_v7 }
  0xe5   :  { %v423_v51 = vmax.f32 %v277_v47, 0.0  ;;  %v451_v13 = vmax.f32 %v417_v6, 0.0 }
  0xe6   :  { %v422_v52 = vmax.f32 %v272_v50, 0.0  ;;  %v1665_v53 = vpop.f32.mrb[4].mxu0  ;;  %1709 = vmatprep.mubr.msk.bf16.mxu1 %vm491_vm2, %v452_v49  ;;  %v450_v16 = vmax.f32 %v412_v11, 0.0 }
  0xe7   :  { %v287_v55 = vadd.f32 %v1665_v53, %v2120_v39  ;;  %v281_v56 = vpop.f32.mrb[5].mxu0 }
  0xe8   :  { %v453_v59 = vpack.c.bf16 %v423_v51, %v422_v52  ;;  %v282_v60 = vadd.f32 %v2120_v39, %v281_v56  ;;  %v2141_v21 = vpack.c.bf16 %v451_v13, %v450_v16 }
  0xe9   :  { %v425_v62 = vmax.f32 %v287_v55, 0.0 }
  0xea   :  { %v424_v0 = vmax.f32 %v282_v60, 0.0  ;;  %v1668_v1 = vpop.f32.mrb[6].mxu0  ;;  %1710 = vmatmul.mubr.msk.bf16.vlgmr.msra.gmra.mrb[4].mxu1 %vm491_vm2, %v453_v59 }
  0xeb   :  { %v297_v4 = vadd.f32 %v1668_v1, %v2120_v39  ;;  %v291_v5 = vpop.f32.mrb[7].mxu0 }
  0xec   :  { %v454_v8 = vpack.c.bf16 %v425_v62, %v424_v0  ;;  %v292_v9 = vadd.f32 %v2120_v39, %v291_v5 }
  0xed   :  { %v427_v12 = vmax.f32 %v297_v4, 0.0 }
  0xee   :  { %v426_v14 = vmax.f32 %v292_v9, 0.0  ;;  %v1671_v15 = vpop.f32.mrb[8].mxu0  ;;  %1713 = vmatprep.mubr.msk.bf16.mxu1 %vm491_vm2, %v454_v8 }
  0xef   :  { %v307_v17 = vadd.f32 %v1671_v15, %v2120_v39  ;;  %v301_v18 = vpop.f32.mrb[9].mxu0 }
  0xf0   :  { %v455_v19 = vpack.c.bf16 %v427_v12, %v426_v14  ;;  %v302_v20 = vadd.f32 %v2120_v39, %v301_v18 }
  0xf1   :  { %v429_v22 = vmax.f32 %v307_v17, 0.0 }
  0xf2   :  { %v428_v23 = vmax.f32 %v302_v20, 0.0  ;;  %v1674_v24 = vpop.f32.mrb[10].mxu0  ;;  %1714 = vmatmul.mubr.msk.bf16.gmra.mrb[8].mxu1 %vm491_vm2, %v455_v19 }
  0xf3   :  { %v317_v25 = vadd.f32 %v1674_v24, %v2120_v39  ;;  %v311_v26 = vpop.f32.mrb[11].mxu0 }
  0xf4   :  { %v456_v27 = vpack.c.bf16 %v429_v22, %v428_v23  ;;  %v312_v28 = vadd.f32 %v2120_v39, %v311_v26 }
  0xf5   :  { %v431_v29 = vmax.f32 %v317_v25, 0.0 }
  0xf6   :  { %v430_v30 = vmax.f32 %v312_v28, 0.0  ;;  %v1677_v31 = vpop.f32.mrb[12].mxu0  ;;  %1717 = vmatprep.mubr.msk.bf16.mxu1 %vm491_vm2, %v456_v27  ;;  %v2179_v27 = vld [vmem:[%s2395_s4] ss:$0 sm:$0xff] }
  0xf7   :  { %v327_v32 = vadd.f32 %v1677_v31, %v2120_v39  ;;  %v321_v33 = vpop.f32.mrb[13].mxu0 }
  0xf8   :  { %v457_v34 = vpack.c.bf16 %v431_v29, %v430_v30  ;;  %v322_v35 = vadd.f32 %v2120_v39, %v321_v33 }
  0xf9   :  { %v433_v36 = vmax.f32 %v327_v32, 0.0 }
  0xfa   :  { %v432_v37 = vmax.f32 %v322_v35, 0.0  ;;  %v1680_v38 = vpop.f32.mrb[14].mxu0  ;;  %1718 = vmatmul.mubr.msk.bf16.gmra.mrb[12].mxu1 %vm491_vm2, %v457_v34 }
  0xfb   :  { %v337_v40 = vadd.f32 %v1680_v38, %v2120_v39  ;;  %v331_v41 = vpop.f32.mrb[15].mxu0 }
  0xfc   :  { %v458_v42 = vpack.c.bf16 %v433_v36, %v432_v37  ;;  %v332_v43 = vadd.f32 %v2120_v39, %v331_v41 }
  0xfd   :  { %v435_v44 = vmax.f32 %v337_v40, 0.0 }
  0xfe   :  { %v434_v45 = vmax.f32 %v332_v43, 0.0  ;;  %v1683_v46 = vpop.f32.mrb[16].mxu0  ;;  %1721 = vmatprep.mubr.msk.bf16.mxu1 %vm491_vm2, %v458_v42 }
  0xff   :  { %v347_v47 = vadd.f32 %v1683_v46, %v2120_v39  ;;  %v341_v48 = vpop.f32.mrb[17].mxu0 }
 0x100   :  { %v459_v49 = vpack.c.bf16 %v435_v44, %v434_v45  ;;  %v342_v50 = vadd.f32 %v2120_v39, %v341_v48 }
 0x101   :  { %v437_v51 = vmax.f32 %v347_v47, 0.0 }
 0x102   :  { %v436_v52 = vmax.f32 %v342_v50, 0.0  ;;  %v1686_v53 = vpop.f32.mrb[18].mxu0  ;;  %1722 = vmatmul.mubr.msk.bf16.gmra.mrb[16].mxu1 %vm491_vm2, %v459_v49 }
 0x103   :  { %v357_v54 = vadd.f32 %v1686_v53, %v2120_v39  ;;  %v351_v55 = vpop.f32.mrb[19].mxu0 }
 0x104   :  { %v460_v56 = vpack.c.bf16 %v437_v51, %v436_v52  ;;  %v352_v57 = vadd.f32 %v2120_v39, %v351_v55 }
 0x105   :  { %v439_v58 = vmax.f32 %v357_v54, 0.0 }
 0x106   :  { %v438_v59 = vmax.f32 %v352_v57, 0.0  ;;  %v1689_v60 = vpop.f32.mrb[20].mxu0  ;;  %1725 = vmatprep.mubr.msk.bf16.mxu1 %vm491_vm2, %v460_v56 }
 0x107   :  { %v367_v61 = vadd.f32 %v1689_v60, %v2120_v39  ;;  %v361_v62 = vpop.f32.mrb[21].mxu0 }
 0x108   :  { %v461_v63 = vpack.c.bf16 %v439_v58, %v438_v59  ;;  %v362_v0 = vadd.f32 %v2120_v39, %v361_v62 }
 0x109   :  { %v441_v1 = vmax.f32 %v367_v61, 0.0 }
 0x10a   :  { %v440_v2 = vmax.f32 %v362_v0, 0.0  ;;  %v1692_v3 = vpop.f32.mrb[22].mxu0  ;;  %1726 = vmatmul.mubr.msk.bf16.gmra.mrb[20].mxu1 %vm491_vm2, %v461_v63 }
 0x10b   :  { %v377_v4 = vadd.f32 %v1692_v3, %v2120_v39  ;;  %v371_v5 = vpop.f32.mrb[23].mxu0 }
 0x10c   :  { %v462_v6 = vpack.c.bf16 %v441_v1, %v440_v2  ;;  %v372_v7 = vadd.f32 %v2120_v39, %v371_v5 }
 0x10d   :  { %v443_v8 = vmax.f32 %v377_v4, 0.0 }
 0x10e   :  { %v442_v9 = vmax.f32 %v372_v7, 0.0  ;;  %v1695_v11 = vpop.f32.mrb[24].mxu0  ;;  %1729 = vmatprep.mubr.msk.bf16.mxu1 %vm491_vm2, %v462_v6 }
 0x10f   :  { %v387_v12 = vadd.f32 %v1695_v11, %v2120_v39  ;;  %v381_v13 = vpop.f32.mrb[25].mxu0 }
 0x110   :  { %v463_v14 = vpack.c.bf16 %v443_v8, %v442_v9  ;;  %v382_v15 = vadd.f32 %v2120_v39, %v381_v13 }
 0x111   :  { %v445_v16 = vmax.f32 %v387_v12, 0.0 }
 0x112   :  { %v444_v17 = vmax.f32 %v382_v15, 0.0  ;;  %v1698_v18 = vpop.f32.mrb[26].mxu0  ;;  %1730 = vmatmul.mubr.msk.bf16.gmra.mrb[24].mxu1 %vm491_vm2, %v463_v14 }
 0x113   :  { %v397_v19 = vadd.f32 %v1698_v18, %v2120_v39  ;;  %v391_v20 = vpop.f32.mrb[27].mxu0 }
 0x114   :  { %v464_v22 = vpack.c.bf16 %v445_v16, %v444_v17  ;;  %v392_v23 = vadd.f32 %v2120_v39, %v391_v20 }
 0x115   :  { %v447_v24 = vmax.f32 %v397_v19, 0.0 }
 0x116   :  { %v446_v25 = vmax.f32 %v392_v23, 0.0  ;;  %1733 = vmatprep.mubr.msk.bf16.mxu1 %vm491_vm2, %v464_v22 }
 0x118   :  { %v465_v26 = vpack.c.bf16 %v447_v24, %v446_v25 }
 0x11a   :  { %1734 = vmatmul.mubr.msk.bf16.gmra.mrb[28].mxu1 %vm491_vm2, %v465_v26 }
 0x11b   :  { %1737 = vmatprep.mubr.msk.bf16.mxu1 %vm491_vm2, %v2135_v10 }
 0x122   :  { %1738 = vmatmul.mubr.msk.bf16.gmra.mrb[32].mxu1 %vm491_vm2, %v2141_v21 }
 0x1bd   :  { %v1711_v28 = vpop.f32.mrb[4].mxu1 }
 0x1be   :  { %v583_v39 = vadd.f32 %v1711_v28, %v2179_v27  ;;  %v574_v29 = vpop.f32.mrb[5].mxu1 }
 0x1bf   :  { %v575_v30 = vadd.f32 %v2179_v27, %v574_v29  ;;  %v1712_v31 = vpop.f32.mrb[6].mxu1 }
 0x1c0   :  { %v586_v32 = vadd.f32 %v1712_v31, %v2179_v27  ;;  %v577_v33 = vpop.f32.mrb[7].mxu1  ;;  %v703_v34 = vmax.f32 %v583_v39, 0.0 }
 0x1c1   :  { %v578_v10 = vadd.f32 %v2179_v27, %v577_v33  ;;  %v701_v21 = vmax.f32 %v575_v30, 0.0 }
 0x1c2   :  { %v704_v35 = vmax.f32 %v586_v32, 0.0 }
 0x1c3   :  { %v702_v36 = vmax.f32 %v578_v10, 0.0 }
 0x1c4   :  { %v734_v37 = vpack.c.bf16 %v704_v35, %v703_v34 }
 0x1c5   :  { %v733_v38 = vpack.c.bf16 %v702_v36, %v701_v21  ;;  %v1715_v40 = vpop.f32.mrb[8].mxu1 }
 0x1c6   :  { %v599_v41 = vadd.f32 %v1715_v40, %v2179_v27  ;;  %v590_v42 = vpop.f32.mrb[9].mxu1 }
 0x1c7   :  { %v591_v43 = vadd.f32 %v2179_v27, %v590_v42  ;;  %v1716_v44 = vpop.f32.mrb[10].mxu1  ;;  %1749 = vmatprep.mubr.msk.bf16.mxu0 %vm788_vm3, %v733_v38 }
 0x1c8   :  { %v602_v45 = vadd.f32 %v1716_v44, %v2179_v27  ;;  %v593_v46 = vpop.f32.mrb[11].mxu1  ;;  %1750 = vmatmul.mubr.msk.bf16.vlgmr.msra.gmra.mrb[28].mxu0 %vm788_vm3, %v734_v37  ;;  %v707_v48 = vmax.f32 %v599_v41, 0.0 }
 0x1c9   :  { %v594_v47 = vadd.f32 %v2179_v27, %v593_v46  ;;  %v705_v50 = vmax.f32 %v591_v43, 0.0 }
 0x1ca   :  { %v708_v49 = vmax.f32 %v602_v45, 0.0 }
 0x1cb   :  { %v706_v51 = vmax.f32 %v594_v47, 0.0 }
 0x1cc   :  { %v736_v52 = vpack.c.bf16 %v708_v49, %v707_v48 }
 0x1cd   :  { %v735_v53 = vpack.c.bf16 %v706_v51, %v705_v50  ;;  %v1719_v54 = vpop.f32.mrb[12].mxu1 }
 0x1ce   :  { %v615_v55 = vadd.f32 %v1719_v54, %v2179_v27  ;;  %v606_v56 = vpop.f32.mrb[13].mxu1 }
 0x1cf   :  { %v607_v57 = vadd.f32 %v2179_v27, %v606_v56  ;;  %v1720_v58 = vpop.f32.mrb[14].mxu1  ;;  %1753 = vmatprep.mubr.msk.bf16.mxu0 %vm788_vm3, %v735_v53 }
 0x1d0   :  { %v618_v59 = vadd.f32 %v1720_v58, %v2179_v27  ;;  %v609_v60 = vpop.f32.mrb[15].mxu1  ;;  %1754 = vmatmul.mubr.msk.bf16.gmra.mrb[32].mxu0 %vm788_vm3, %v736_v52  ;;  %v711_v62 = vmax.f32 %v615_v55, 0.0 }
 0x1d1   :  { %v610_v61 = vadd.f32 %v2179_v27, %v609_v60  ;;  %v709_v0 = vmax.f32 %v607_v57, 0.0 }
 0x1d2   :  { %v712_v63 = vmax.f32 %v618_v59, 0.0 }
 0x1d3   :  { %v710_v1 = vmax.f32 %v610_v61, 0.0 }
 0x1d4   :  { %v738_v2 = vpack.c.bf16 %v712_v63, %v711_v62 }
 0x1d5   :  { %v737_v3 = vpack.c.bf16 %v710_v1, %v709_v0  ;;  %v1723_v4 = vpop.f32.mrb[16].mxu1 }
 0x1d6   :  { %v631_v5 = vadd.f32 %v1723_v4, %v2179_v27  ;;  %v622_v6 = vpop.f32.mrb[17].mxu1 }
 0x1d7   :  { %v623_v7 = vadd.f32 %v2179_v27, %v622_v6  ;;  %v1724_v8 = vpop.f32.mrb[18].mxu1  ;;  %1757 = vmatprep.mubr.msk.bf16.mxu0 %vm788_vm3, %v737_v3 }
 0x1d8   :  { %v634_v9 = vadd.f32 %v1724_v8, %v2179_v27  ;;  %v625_v11 = vpop.f32.mrb[19].mxu1  ;;  %1758 = vmatmul.mubr.msk.bf16.gmra.mrb[36].mxu0 %vm788_vm3, %v738_v2  ;;  %v715_v13 = vmax.f32 %v631_v5, 0.0 }
 0x1d9   :  { %v626_v12 = vadd.f32 %v2179_v27, %v625_v11  ;;  %v713_v15 = vmax.f32 %v623_v7, 0.0 }
 0x1da   :  { %v716_v14 = vmax.f32 %v634_v9, 0.0 }
 0x1db   :  { %v714_v16 = vmax.f32 %v626_v12, 0.0  ;;  %v1881_v12 = vmov 0.0  }
 0x1dc   :  { %v740_v17 = vpack.c.bf16 %v716_v14, %v715_v13  ;;  %1781 = vmatprep.subr.bf16.mxu1 %v1881_v12  ;;  %v1855_v13 = vld [vmem:[%s2396_s7] sm:$0xff]   ;;  %1833 = vmatprep.subr.bf16.mxu0 %v1881_v12  ;;  %v1857_v14 = vld [vmem:[%s2396_s7 + $0x10] sm:$0xff]  }
 0x1dd   :  { %v739_v18 = vpack.c.bf16 %v714_v16, %v713_v15  ;;  %v1727_v19 = vpop.f32.mrb[20].mxu1  ;;  %1782 = vmatpush3.bf16.msra.mxu1 %v1855_v13  ;;  %v1858_v15 = vld [vmem:[%s2396_s7 + $0x18] sm:$0xff]   ;;  %v1859_v16 = vld [vmem:[%s2396_s7 + $0x20] sm:$0xff]   ;;  %1797 = vmatprep.mubr.msk.bf16.mxu1 %vm1882_vm4, %v1881_v12 }
 0x1de   :  { %v647_v20 = vadd.f32 %v1727_v19, %v2179_v27  ;;  %v638_v22 = vpop.f32.mrb[21].mxu1  ;;  %1783 = vmatprep.subr.bf16.mxu1 %v1881_v12  ;;  %v1862_v19 = vld [vmem:[%s2396_s7 + $0x38] sm:$0xff]  }
 0x1df   :  { %v639_v23 = vadd.f32 %v2179_v27, %v638_v22  ;;  %v1728_v24 = vpop.f32.mrb[22].mxu1  ;;  %1761 = vmatprep.mubr.msk.bf16.mxu0 %vm788_vm3, %v739_v18  ;;  %v1861_v18 = vld [vmem:[%s2396_s7 + $0x30] sm:$0xff]  }
 0x1e0   :  { %v650_v25 = vadd.f32 %v1728_v24, %v2179_v27  ;;  %v641_v26 = vpop.f32.mrb[23].mxu1  ;;  %1762 = vmatmul.mubr.msk.bf16.gmra.mrb[40].mxu0 %vm788_vm3, %v740_v17  ;;  %v719_v39 = vmax.f32 %v647_v20, 0.0  ;;  %v1860_v17 = vld [vmem:[%s2396_s7 + $0x28] sm:$0xff]   ;;  %v2270_v20 = vld [vmem:[%s2398_s6] ss:$0 sm:$0xff] }
 0x1e1   :  { %v642_v28 = vadd.f32 %v2179_v27, %v641_v26  ;;  %v717_v30 = vmax.f32 %v639_v23, 0.0 }
 0x1e2   :  { %v720_v29 = vmax.f32 %v650_v25, 0.0 }
 0x1e3   :  { %v718_v31 = vmax.f32 %v642_v28, 0.0 }
 0x1e4   :  { %v742_v32 = vpack.c.bf16 %v720_v29, %v719_v39 }
 0x1e5   :  { %v741_v33 = vpack.c.bf16 %v718_v31, %v717_v30  ;;  %v1731_v10 = vpop.f32.mrb[24].mxu1 }
 0x1e6   :  { %v663_v34 = vadd.f32 %v1731_v10, %v2179_v27  ;;  %v654_v35 = vpop.f32.mrb[25].mxu1 }
 0x1e7   :  { %v655_v21 = vadd.f32 %v2179_v27, %v654_v35  ;;  %v1732_v36 = vpop.f32.mrb[26].mxu1  ;;  %1765 = vmatprep.mubr.msk.bf16.mxu0 %vm788_vm3, %v741_v33 }
 0x1e8   :  { %v666_v37 = vadd.f32 %v1732_v36, %v2179_v27  ;;  %v657_v38 = vpop.f32.mrb[27].mxu1  ;;  %1766 = vmatmul.mubr.msk.bf16.gmra.mrb[44].mxu0 %vm788_vm3, %v742_v32  ;;  %v723_v41 = vmax.f32 %v663_v34, 0.0 }
 0x1e9   :  { %v658_v40 = vadd.f32 %v2179_v27, %v657_v38  ;;  %v721_v43 = vmax.f32 %v655_v21, 0.0 }
 0x1ea   :  { %v724_v42 = vmax.f32 %v666_v37, 0.0 }
 0x1eb   :  { %v722_v44 = vmax.f32 %v658_v40, 0.0 }
 0x1ec   :  { %v744_v45 = vpack.c.bf16 %v724_v42, %v723_v41 }
 0x1ed   :  { %v743_v46 = vpack.c.bf16 %v722_v44, %v721_v43  ;;  %v1735_v47 = vpop.f32.mrb[28].mxu1 }
 0x1ee   :  { %v679_v48 = vadd.f32 %v1735_v47, %v2179_v27  ;;  %v670_v49 = vpop.f32.mrb[29].mxu1 }
 0x1ef   :  { %v671_v50 = vadd.f32 %v2179_v27, %v670_v49  ;;  %v1736_v51 = vpop.f32.mrb[30].mxu1  ;;  %1769 = vmatprep.mubr.msk.bf16.mxu0 %vm788_vm3, %v743_v46 }
 0x1f0   :  { %v682_v52 = vadd.f32 %v1736_v51, %v2179_v27  ;;  %v673_v53 = vpop.f32.mrb[31].mxu1  ;;  %1770 = vmatmul.mubr.msk.bf16.gmra.mrb[48].mxu0 %vm788_vm3, %v744_v45  ;;  %v727_v55 = vmax.f32 %v679_v48, 0.0 }
 0x1f1   :  { %v674_v54 = vadd.f32 %v2179_v27, %v673_v53  ;;  %v725_v57 = vmax.f32 %v671_v50, 0.0 }
 0x1f2   :  { %v728_v56 = vmax.f32 %v682_v52, 0.0 }
 0x1f3   :  { %v726_v58 = vmax.f32 %v674_v54, 0.0 }
 0x1f4   :  { %v746_v59 = vpack.c.bf16 %v728_v56, %v727_v55 }
 0x1f5   :  { %v745_v60 = vpack.c.bf16 %v726_v58, %v725_v57  ;;  %v1739_v61 = vpop.f32.mrb[32].mxu1 }
 0x1f6   :  { %v695_v62 = vadd.f32 %v1739_v61, %v2179_v27  ;;  %v686_v63 = vpop.f32.mrb[33].mxu1 }
 0x1f7   :  { %v687_v0 = vadd.f32 %v2179_v27, %v686_v63  ;;  %v1740_v1 = vpop.f32.mrb[34].mxu1  ;;  %1773 = vmatprep.mubr.msk.bf16.mxu0 %vm788_vm3, %v745_v60 }
 0x1f8   :  { %v698_v2 = vadd.f32 %v1740_v1, %v2179_v27  ;;  %v689_v3 = vpop.f32.mrb[35].mxu1  ;;  %1774 = vmatmul.mubr.msk.bf16.gmra.mrb[52].mxu0 %vm788_vm3, %v746_v59  ;;  %v731_v5 = vmax.f32 %v695_v62, 0.0 }
 0x1f9   :  { %v690_v4 = vadd.f32 %v2179_v27, %v689_v3  ;;  %v729_v7 = vmax.f32 %v687_v0, 0.0  ;;  %v1856_v27 = vld [vmem:[%s2396_s7 + $0x8] sm:$0xff]  }
 0x1fa   :  { %v732_v6 = vmax.f32 %v698_v2, 0.0  ;;  %1784 = vmatpush3.bf16.msra.mxu1 %v1856_v27 }
 0x1fb   :  { %v730_v8 = vmax.f32 %v690_v4, 0.0  ;;  %1785 = vmatprep.subr.bf16.mxu1 %v1881_v12 }
 0x1fc   :  { %v748_v9 = vpack.c.bf16 %v732_v6, %v731_v5 }
 0x1fd   :  { %v747_v11 = vpack.c.bf16 %v730_v8, %v729_v7 }
 0x1fe   :  { %1786 = vmatpush3.bf16.msra.mxu1 %v1857_v14 }
 0x1ff   :  { %1777 = vmatprep.mubr.msk.bf16.mxu0 %vm788_vm3, %v747_v11  ;;  %1787 = vmatprep.subr.bf16.mxu1 %v1881_v12 }
 0x200   :  { %1778 = vmatmul.mubr.msk.bf16.gmra.mrb[56].mxu0 %vm788_vm3, %v748_v9 }
 0x201   :  { %1841 = vmatprep.mubr.msk.bf16.mxu0 %vm1882_vm4, %v1881_v12 }
 0x202   :  { %1788 = vmatpush3.bf16.msra.mxu1 %v1858_v15 }
 0x203   :  { %1789 = vmatprep.subr.bf16.mxu1 %v1881_v12 }
 0x206   :  { %1790 = vmatpush3.bf16.msra.mxu1 %v1859_v16 }
 0x207   :  { %1791 = vmatprep.subr.bf16.mxu1 %v1881_v12 }
 0x20a   :  { %1792 = vmatpush3.bf16.msra.mxu1 %v1860_v17 }
 0x20b   :  { %1793 = vmatprep.subr.bf16.mxu1 %v1881_v12 }
 0x20e   :  { %1794 = vmatpush3.bf16.msra.mxu1 %v1861_v18 }
 0x20f   :  { %1795 = vmatprep.subr.bf16.mxu1 %v1881_v12 }
 0x212   :  { %1796 = vmatpush3.bf16.msra.mxu1 %v1862_v19 }
 0x213   :  { %1801 = vmatprep.subr.bf16.mxu1 %v1881_v12 }
 0x29b   :  { %v1751_v22 = vpop.f32.mrb[28].mxu0 }
 0x29c   :  { %v880_v23 = vadd.f32 %v1751_v22, %v2270_v20  ;;  %v871_v24 = vpop.f32.mrb[29].mxu0 }
 0x29d   :  { %v872_v25 = vadd.f32 %v2270_v20, %v871_v24  ;;  %v1752_v26 = vpop.f32.mrb[30].mxu0 }
 0x29e   :  { %v883_v28 = vadd.f32 %v1752_v26, %v2270_v20  ;;  %v874_v39 = vpop.f32.mrb[31].mxu0 }
 0x29f   :  { %v998_v29 = vmax.f32 %v872_v25, %v880_v23  ;;  %v875_v30 = vadd.f32 %v2270_v20, %v874_v39 }
 0x2a1   :  { %v999_v31 = vmax.f32 %v875_v30, %v883_v28 }
 0x2a3   :  { %v1755_v32 = vpop.f32.mrb[32].mxu0 }
 0x2a4   :  { %v887_v33 = vpop.f32.mrb[33].mxu0  ;;  %v896_v21 = vadd.f32 %v1755_v32, %v2270_v20 }
 0x2a5   :  { %v888_v10 = vadd.f32 %v2270_v20, %v887_v33  ;;  %v1756_v34 = vpop.f32.mrb[34].mxu0 }
 0x2a6   :  { %v890_v35 = vpop.f32.mrb[35].mxu0  ;;  %v899_v38 = vadd.f32 %v1756_v34, %v2270_v20 }
 0x2a7   :  { %v1000_v36 = vmax.f32 %v998_v29, %v888_v10  ;;  %v891_v37 = vadd.f32 %v2270_v20, %v890_v35 }
 0x2a9   :  { %v1001_v40 = vmax.f32 %v999_v31, %v891_v37  ;;  %v1002_v41 = vmax.f32 %v1000_v36, %v896_v21 }
 0x2ab   :  { %v1759_v42 = vpop.f32.mrb[36].mxu0  ;;  %v1003_v43 = vmax.f32 %v1001_v40, %v899_v38 }
 0x2ac   :  { %v903_v44 = vpop.f32.mrb[37].mxu0  ;;  %v912_v48 = vadd.f32 %v1759_v42, %v2270_v20 }
 0x2ad   :  { %v904_v45 = vadd.f32 %v2270_v20, %v903_v44  ;;  %v1760_v46 = vpop.f32.mrb[38].mxu0 }
 0x2ae   :  { %v906_v47 = vpop.f32.mrb[39].mxu0  ;;  %v915_v51 = vadd.f32 %v1760_v46, %v2270_v20 }
 0x2af   :  { %v1004_v49 = vmax.f32 %v1002_v41, %v904_v45  ;;  %v907_v50 = vadd.f32 %v2270_v20, %v906_v47 }
 0x2b1   :  { %v1005_v52 = vmax.f32 %v1003_v43, %v907_v50  ;;  %v1006_v53 = vmax.f32 %v1004_v49, %v912_v48 }
 0x2b3   :  { %v1763_v54 = vpop.f32.mrb[40].mxu0  ;;  %v1007_v55 = vmax.f32 %v1005_v52, %v915_v51 }
 0x2b4   :  { %v919_v56 = vpop.f32.mrb[41].mxu0  ;;  %v928_v60 = vadd.f32 %v1763_v54, %v2270_v20 }
 0x2b5   :  { %v920_v57 = vadd.f32 %v2270_v20, %v919_v56  ;;  %v1764_v58 = vpop.f32.mrb[42].mxu0 }
 0x2b6   :  { %v922_v59 = vpop.f32.mrb[43].mxu0  ;;  %v931_v0 = vadd.f32 %v1764_v58, %v2270_v20 }
 0x2b7   :  { %v1008_v61 = vmax.f32 %v1006_v53, %v920_v57  ;;  %v923_v62 = vadd.f32 %v2270_v20, %v922_v59 }
 0x2b9   :  { %v1010_v63 = vmax.f32 %v1008_v61, %v928_v60  ;;  %v1009_v1 = vmax.f32 %v1007_v55, %v923_v62 }
 0x2bb   :  { %v1011_v2 = vmax.f32 %v1009_v1, %v931_v0  ;;  %v1767_v3 = vpop.f32.mrb[44].mxu0 }
 0x2bc   :  { %v944_v4 = vadd.f32 %v1767_v3, %v2270_v20  ;;  %v935_v5 = vpop.f32.mrb[45].mxu0 }
 0x2bd   :  { %v1012_v6 = vmax.f32 %v1010_v63, %v1011_v2  ;;  %v936_v7 = vadd.f32 %v2270_v20, %v935_v5  ;;  %v1768_v8 = vpop.f32.mrb[46].mxu0 }
 0x2be   :  { %v947_v9 = vadd.f32 %v1768_v8, %v2270_v20  ;;  %v938_v11 = vpop.f32.mrb[47].mxu0  ;;  %v1865_v8 = vld [vmem:[%s2397_s9 + $0x10] sm:$0xff]  }
 0x2bf   :  { %v1019_v13 = vmax.f32 %v936_v7, %v944_v4  ;;  %v939_v27 = vadd.f32 %v2270_v20, %v938_v11  ;;  %v1013_v21 = vrot.slane %v1012_v6, 4  ;;  %v1864_v7 = vld [vmem:[%s2397_s9 + $0x8] sm:$0xff]   ;;  %v1875_v11 = vld [vmem:[%s2400_s13] sm:$0xff]  }
 0x2c0   :  { %1834 = vmatpush3.bf16.msra.mxu0 %v1875_v11 }
 0x2c1   :  { %v1020_v14 = vmax.f32 %v939_v27, %v947_v9  ;;  %v1014_v43 = vmax.f32 %v1012_v6, %v1013_v21  ;;  %v1866_v9 = vld [vmem:[%s2397_s9 + $0x18] sm:$0xff]   ;;  %1835 = vmatprep.subr.bf16.mxu0 %v1881_v12  ;;  %v1526_v27 = vld [vmem:[%s2401_s8] ss:$0 sm:$0xff] }
 0x2c2   :  { %v1541_v21 = vld [vmem:[%s2402_s12] ss:$0 sm:$0xff] }
 0x2c3   :  { %v1771_v15 = vpop.f32.mrb[48].mxu0  ;;  %v1015_v50 = vrot.slane %v1014_v43, 2 }
 0x2c4   :  { %v951_v16 = vpop.f32.mrb[49].mxu0  ;;  %v960_v22 = vadd.f32 %v1771_v15, %v2270_v20 }
 0x2c5   :  { %v952_v17 = vadd.f32 %v2270_v20, %v951_v16  ;;  %v1772_v18 = vpop.f32.mrb[50].mxu0  ;;  %v1016_v55 = vmax.f32 %v1014_v43, %v1015_v50 }
 0x2c6   :  { %v954_v19 = vpop.f32.mrb[51].mxu0  ;;  %v963_v25 = vadd.f32 %v1772_v18, %v2270_v20 }
 0x2c7   :  { %v1021_v23 = vmax.f32 %v1019_v13, %v952_v17  ;;  %v955_v24 = vadd.f32 %v2270_v20, %v954_v19  ;;  %v1017_v58 = vrot.slane %v1016_v55, 1  ;;  %v1876_v13 = vld [vmem:[%s2400_s13 + $0x8] sm:$0xff]  }
 0x2c8   :  { %1836 = vmatpush3.bf16.msra.mxu0 %v1876_v13 }
 0x2c9   :  { %v1022_v26 = vmax.f32 %v1020_v14, %v955_v24  ;;  %v1023_v28 = vmax.f32 %v1021_v23, %v960_v22  ;;  %v1018_v61 = vmax.f32 %v1016_v55, %v1017_v58  ;;  %1837 = vmatprep.subr.bf16.mxu0 %v1881_v12  ;;  %v1867_v22 = vld [vmem:[%s2399_s11] sm:$0xff]   ;;  %v1868_v24 = vld [vmem:[%s2399_s11 + $0x8] sm:$0xff]  }
 0x2cb   :  { %v1775_v39 = vpop.f32.mrb[52].mxu0  ;;  %v1024_v29 = vmax.f32 %v1022_v26, %v963_v25  ;;  %v1040_v0 = vpack.c.bf16 %v1018_v61, %v1018_v61  ;;  %v1869_v25 = vld [vmem:[%s2399_s11 + $0x10] sm:$0xff]   ;;  %v1870_v26 = vld [vmem:[%s2399_s11 + $0x18] sm:$0xff]  }
 0x2cc   :  { %v967_v30 = vpop.f32.mrb[53].mxu0  ;;  %v976_v10 = vadd.f32 %v1775_v39, %v2270_v20  ;;  %v1872_v39 = vld [vmem:[%s2399_s11 + $0x28] sm:$0xff]  }
 0x2cd   :  { %v968_v31 = vadd.f32 %v2270_v20, %v967_v30  ;;  %v1776_v32 = vpop.f32.mrb[54].mxu0  ;;  %v1067_v3 = vunpack.c.l.b16 %v1040_v0  ;;  %v1874_v30 = vld [vmem:[%s2399_s11 + $0x38] sm:$0xff]  }
 0x2ce   :  { %v970_v33 = vpop.f32.mrb[55].mxu0  ;;  %v979_v36 = vadd.f32 %v1776_v32, %v2270_v20  ;;  %v1878_v32 = vld [vmem:[%s2400_s13 + $0x18] sm:$0xff]  }
 0x2cf   :  { %v1025_v34 = vmax.f32 %v1023_v28, %v968_v31  ;;  %v971_v35 = vadd.f32 %v2270_v20, %v970_v33  ;;  %v1871_v28 = vld [vmem:[%s2399_s11 + $0x20] sm:$0xff]   ;;  %v1877_v31 = vld [vmem:[%s2400_s13 + $0x10] sm:$0xff]  }
 0x2d0   :  { %1838 = vmatpush3.bf16.msra.mxu0 %v1877_v31 }
 0x2d1   :  { %v1026_v37 = vmax.f32 %v1024_v29, %v971_v35  ;;  %v1027_v38 = vmax.f32 %v1025_v34, %v976_v10  ;;  %v1873_v29 = vld [vmem:[%s2399_s11 + $0x30] sm:$0xff]   ;;  %1839 = vmatprep.subr.bf16.mxu0 %v1881_v12 }
 0x2d3   :  { %v1779_v40 = vpop.f32.mrb[56].mxu0  ;;  %v1028_v41 = vmax.f32 %v1026_v37, %v979_v36 }
 0x2d4   :  { %v983_v42 = vpop.f32.mrb[57].mxu0  ;;  %v992_v47 = vadd.f32 %v1779_v40, %v2270_v20  ;;  %1840 = vmatpush3.bf16.msra.mxu0 %v1878_v32 }
 0x2d5   :  { %v984_v44 = vadd.f32 %v2270_v20, %v983_v42  ;;  %v1780_v45 = vpop.f32.mrb[58].mxu0 }
 0x2d6   :  { %v986_v46 = vpop.f32.mrb[59].mxu0  ;;  %v995_v52 = vadd.f32 %v1780_v45, %v2270_v20 }
 0x2d7   :  { %v1029_v48 = vmax.f32 %v1027_v38, %v984_v44  ;;  %v987_v49 = vadd.f32 %v2270_v20, %v986_v46  ;;  %v1863_v20 = vld [vmem:[%s2397_s9] sm:$0xff]  }
 0x2d9   :  { %v1031_v51 = vmax.f32 %v1029_v48, %v992_v47  ;;  %v1030_v53 = vmax.f32 %v1028_v41, %v987_v49 }
 0x2db   :  { %v1032_v54 = vmax.f32 %v1030_v53, %v995_v52  ;;  %v1443_v52 = vld [vmem:[%s2405_s15] sm:$0x3] }
 0x2dd   :  { %v1033_v56 = vmax.f32 %v1031_v51, %v1032_v54  ;;  %v1535_v51 = vld [vmem:[%s2404_s10] ss:$0 sm:$0xff] }
 0x2df   :  { %v1034_v57 = vrot.slane %v1033_v56, 4 }
 0x2e1   :  { %v1035_v59 = vmax.f32 %v1033_v56, %v1034_v57 }
 0x2e3   :  { %v1036_v60 = vrot.slane %v1035_v59, 2 }
 0x2e5   :  { %v1037_v62 = vmax.f32 %v1035_v59, %v1036_v60 }
 0x2e7   :  { %v1038_v63 = vrot.slane %v1037_v62, 1 }
 0x2e9   :  { %v1039_v1 = vmax.f32 %v1037_v62, %v1038_v63 }
 0x2eb   :  { %v1041_v2 = vpack.c.bf16 %v1039_v1, %v1039_v1 }
 0x2ed   :  { %v1068_v4 = vunpack.c.l.b16 %v1041_v2 }
 0x2ef   :  { %v1070_v5 = vsel %vm1069_vm5, %v1068_v4, %v1067_v3 }
 0x2f0   :  { %v1071_v6 = vpack.c.b16 %v1070_v5, %v1070_v5 }
 0x2f2   :  { %1798 = vmatmul.mubr.bf16.vlgmr.msra.gmra.mrb[36].mxu1 %v1071_v6 }
 0x2f3   :  { %1802 = vmatpush3.bf16.msra.mxu1 %v1863_v20  ;;  %1809 = vmatprep.mubr.msk.bf16.mxu1 %vm1882_vm4, %v1881_v12 }
 0x2f4   :  { %1803 = vmatprep.subr.bf16.mxu1 %v1881_v12 }
 0x2f7   :  { %1804 = vmatpush3.bf16.msra.mxu1 %v1864_v7 }
 0x2f8   :  { %1805 = vmatprep.subr.bf16.mxu1 %v1881_v12 }
 0x2fb   :  { %1806 = vmatpush3.bf16.msra.mxu1 %v1865_v8 }
 0x2fc   :  { %1807 = vmatprep.subr.bf16.mxu1 %v1881_v12 }
 0x2ff   :  { %1808 = vmatpush3.bf16.msra.mxu1 %v1866_v9 }
 0x300   :  { %1813 = vmatprep.subr.bf16.mxu1 %v1881_v12 }
 0x3c5   :  { %v1155_v14 = vpop.f32.mrb[36].mxu1 }
 0x3c6   :  { %v1156_v15 = vadd.f32 %v1526_v27, %v1155_v14  ;;  %v1799_v16 = vpop.f32.mrb[37].mxu1 }
 0x3c7   :  { %v1158_v17 = vpop.f32.mrb[38].mxu1 }
 0x3c8   :  { %v1161_v18 = vmax.f32 %v1156_v15, 0.0  ;;  %v1800_v19 = vpop.f32.mrb[39].mxu1 }
 0x3ca   :  { %v1162_v23 = vpack.c.bf16 %v1161_v18, %v1161_v18 }
 0x3cc   :  { %1810 = vmatmul.mubr.msk.bf16.vlgmr.msra.gmra.mrb[40].mxu1 %vm788_vm3, %v1162_v23 }
 0x3cd   :  { %1814 = vmatpush3.bf16.msra.mxu1 %v1867_v22  ;;  %1829 = vmatprep.mubr.msk.bf16.mxu1 %vm1882_vm4, %v1881_v12 }
 0x3ce   :  { %1815 = vmatprep.subr.bf16.mxu1 %v1881_v12 }
 0x3d1   :  { %1816 = vmatpush3.bf16.msra.mxu1 %v1868_v24 }
 0x3d2   :  { %1817 = vmatprep.subr.bf16.mxu1 %v1881_v12 }
 0x3d5   :  { %1818 = vmatpush3.bf16.msra.mxu1 %v1869_v25 }
 0x3d6   :  { %1819 = vmatprep.subr.bf16.mxu1 %v1881_v12 }
 0x3d9   :  { %1820 = vmatpush3.bf16.msra.mxu1 %v1870_v26 }
 0x3da   :  { %1821 = vmatprep.subr.bf16.mxu1 %v1881_v12 }
 0x3dd   :  { %1822 = vmatpush3.bf16.msra.mxu1 %v1871_v28 }
 0x3de   :  { %1823 = vmatprep.subr.bf16.mxu1 %v1881_v12 }
 0x3e1   :  { %1824 = vmatpush3.bf16.msra.mxu1 %v1872_v39 }
 0x3e2   :  { %1825 = vmatprep.subr.bf16.mxu1 %v1881_v12 }
 0x3e5   :  { %1826 = vmatpush3.bf16.msra.mxu1 %v1873_v29 }
 0x3e6   :  { %1827 = vmatprep.subr.bf16.mxu1 %v1881_v12  ;;  %v1550_v12 = vld [vmem:[%s2403_s14] ss:$0 sm:$0xff] }
 0x3e9   :  { %1828 = vmatpush3.bf16.msra.mxu1 %v1874_v30 }
 0x3ec   :  { %1830 = vmatmul.mubr.bf16.vlgmr.msra.gmra.mrb[44].mxu1 %v1071_v6 }
 0x49f   :  { %v1239_v33 = vpop.f32.mrb[40].mxu1 }
 0x4a0   :  { %v1811_v10 = vpop.f32.mrb[41].mxu1  ;;  %v1240_v54 = vadd.f32 %v1535_v51, %v1239_v33 }
 0x4a1   :  { %v1242_v34 = vpop.f32.mrb[42].mxu1 }
 0x4a2   :  { %v1812_v35 = vpop.f32.mrb[43].mxu1 }
 0x4bf   :  { %v1350_v36 = vpop.f32.mrb[44].mxu1 }
 0x4c0   :  { %v1351_v37 = vadd.f32 %v1541_v21, %v1350_v36  ;;  %v1831_v38 = vpop.f32.mrb[45].mxu1 }
 0x4c1   :  { %v1353_v40 = vpop.f32.mrb[46].mxu1 }
 0x4c2   :  { %v1356_v41 = vmax.f32 %v1351_v37, 0.0  ;;  %v1832_v42 = vpop.f32.mrb[47].mxu1 }
 0x4c4   :  { %v1357_v43 = vpack.c.bf16 %v1356_v41, %v1356_v41 }
 0x4c6   :  { %1842 = vmatmul.mubr.msk.bf16.vlgmr.msra.gmra.mrb[60].mxu0 %vm788_vm3, %v1357_v43 }
 0x599   :  { %v1434_v44 = vpop.f32.mrb[60].mxu0 }
 0x59a   :  { %v1435_v45 = vadd.f32 %v1550_v12, %v1434_v44  ;;  %v1843_v46 = vpop.f32.mrb[61].mxu0 }
 0x59b   :  { %v1437_v47 = vpop.f32.mrb[62].mxu0 }
 0x59c   :  { %v1440_v48 = vmul.f32 0.5, %v1435_v45  ;;  %v1844_v49 = vpop.f32.mrb[63].mxu0 }
 0x59e   :  { %v1441_v50 = vmul.f32 1.442695, %v1440_v48 }
 0x5a0   :  { %1879 = vpow2.f32 %v1441_v50 }
 0x5aa   :  { %v1880_v53 = vpop.eup %1879 }
 0x5ab   :  { %v1444_v55 = vmul.f32 %v1880_v53, %v1443_v52 }
 0x5ad   :  { %v1445_v56 = vadd.f32 %v1444_v55, %v1240_v54 }
 0x5af   :  { %1447 = vst.msk [vmem:[%s2406_s16] sm:$0x3] %vm1446_vm6, %v1445_v56 }

// kernel: feature_extractor_forward.5
= control target key start
LH: loop header
LB: loop body
LE: loop exit
PB: predicated region body
PF: predicated region fallthrough
CT: control target
= control target key end

     0   :  { %s3900_s0 = inlined_call_operand.vmem [shape: f32[2,256,3], index: 0, kind: input, shape index: {}]   ;;  %s3901_s1 = inlined_call_operand.vmem [shape: f32[2,2,19], index: 1, kind: input, shape index: {}]   ;;  %s3902_s2 = inlined_call_operand.vmem [shape: f32[3,32], index: 2, kind: input, shape index: {}]   ;;  %s3903_s3 = inlined_call_operand.vmem [shape: f32[1,32], index: 3, kind: input, shape index: {}]   ;;  %s3904_s4 = inlined_call_operand.vmem [shape: f32[19,32], index: 4, kind: input, shape index: {}]   ;;  %s3905_s5 = inlined_call_operand.vmem [shape: f32[1,32], index: 5, kind: input, shape index: {}]   ;;  %s3906_s6 = inlined_call_operand.vmem [shape: f32[19,32], index: 6, kind: input, shape index: {}]   ;;  %s3907_s7 = inlined_call_operand.vmem [shape: bf16[32,64], index: 7, kind: input, shape index: {}]   ;;  %s3908_s8 = inlined_call_operand.vmem [shape: f32[1,64], index: 8, kind: input, shape index: {}]   ;;  %s3909_s9 = inlined_call_operand.vmem [shape: f32[19,64], index: 9, kind: input, shape index: {}]   ;;  %s3910_s10 = inlined_call_operand.vmem [shape: f32[1,64], index: 10, kind: input, shape index: {}]   ;;  %s3911_s11 = inlined_call_operand.vmem [shape: f32[19,64], index: 11, kind: input, shape index: {}]   ;;  %s3912_s12 = inlined_call_operand.vmem [shape: bf16[64,128], index: 12, kind: input, shape index: {}]   ;;  %s3913_s13 = inlined_call_operand.vmem [shape: f32[1,128], index: 13, kind: input, shape index: {}]   ;;  %s3914_s14 = inlined_call_operand.vmem [shape: f32[2,256,64], index: 14, kind: output, shape index: {0}]   ;;  %s3915_s15 = inlined_call_operand.hbm [shape: f32[2,256,128], index: 15, kind: output, shape index: {1}]  }
   0x1   :  { %3919 = sst [smem:[#allocation7_spill]] %s3900_s0 }
   0x2   :  { %3920 = sst [smem:[#allocation8_spill]] %s3902_s2 }
   0x3   :  { %21 = vsyncpa [#allocation3], 0 }
   0x4   :  { %23 = vsyncpa [#allocation3 + $0x1], 0  ;;  %s2955_s18 = smov 0   ;;  %s2957_s19 = smov 0  }
   0x5   :  { %s2959_s20 = smov 0   ;;  %s2961_s21 = smov 0  }
   0x6 LB: > { %3921 = sst [smem:[#allocation5_spill]] %s2862_s20  ;;  %s2976_s22 = sadd.s32 4294967295, %s2866_s21   ;;  %s2866_s21 = sphi %s2961_s21, %s3934_s21   ;;  %s2862_s20 = sphi %s2959_s20, %s3933_s20   ;;  %s2858_s19 = sphi %s2957_s19, %s3932_s19   ;;  %s2854_s18 = sphi %s2955_s18, %s3931_s18  }
   0x7   : > { %s2376_s23 = sadd.s32 4294967294, %s2866_s21   ;;  %s2980_s24 = sadd.s32 1, %s2866_s21  }
   0x8   : > { %s366_s25 = sadd.s32 1, %s2862_s20  ;;  %s363_s26 = ssub.s32 %s2866_s21, %s2980_s24 }
   0x9   : > { %p376_p0 = scmp.ne.s32.totalorder %s2862_s20, %s2858_s19  ;;  %p364_p1 = scmp.eq.s32.totalorder %s363_s26, 0 }
   0xa   : > { %p377_p2 = scmp.eq.s32.totalorder %s2976_s22, 1  ;;  %p382_p3 = scmp.ne.s32.totalorder %s2858_s19, %s2854_s18 }
   0xb   : > { %p383_p4 = scmp.eq.s32.totalorder %s2376_s23, 1  ;;  %p2379_p7 = scmp.ge.s32.totalorder %s2866_s21, 1 }
   0xc   : > { %s2991_s27 = scalar_select %p364_p1, %s2862_s20, %s366_s25  }
   0xd   : > { %p2993_p5 = por %p377_p2, %p376_p0  ;;  %p2997_p6 = por %p383_p4, %p382_p3 }
   0xe   : > { %3922 = sst [smem:[#allocation6_spill]] %s2991_s27  ;;  %p452_p8 = scmp.lt.s32.totalorder %s2866_s21, 3 }
  0x10   : > { %p453_p9 = pnand %p2379_p7, %p452_p8 }
  0x11   : > { %v891_v0 = vld [vmem:[%s3904_s4] sm:$0xff] (!%p453_p9)  ;;  %v892_v1 = vld [vmem:[%s3904_s4 + $0x8] sm:$0xff] (!%p453_p9)  ;;  %s3925_s2 = sld [smem:[#allocation8_spill]] (!%p453_p9)  ;;  %vm3917_vm0 = vcmask (!%p453_p9), 1042432   ;;  %v2868_v3 = vmov (!%p453_p9), 0.0|0.0   ;;  %p509_p10 = scmp.lt.s32.totalorder (!%p453_p9), %s2976_s22, 1  ;;  %v1064_v60 = vlaneseq (!%p453_p9) }
  0x12   : > { %456 = sbr.rel (%p453_p9) target bundleno = 883 (0x373), region = 76  ;;  %2729 = vmatprep.subr.bf16.mxu1 (!%p453_p9), %v2868_v3  ;;  %v2730_v4 = vpack.c.bf16 (!%p453_p9), %v892_v1, %v891_v0  ;;  %v893_v5 = vld [vmem:[%s3904_s4 + $0x10] sm:$0x7] (!%p453_p9)  ;;  %vm2869_vm1 = vmmov (!%p453_p9), 0   ;;  %v2870_v6 = vmov (!%p453_p9), 0.0   ;;  %v984_v7 = vld [vmem:[%s3906_s6] sm:$0xff] (!%p453_p9) }
  0x13   : > { %2623 = vmatprep.mubr.msk.f32.mxu1 (!%p453_p9), %vm2869_vm1, %v2870_v6  ;;  %v985_v8 = vld [vmem:[%s3906_s6 + $0x8] sm:$0xff] (!%p453_p9)  ;;  %v2790_v9 = vld [vmem:[%s3907_s7] sm:$0xff] (!%p453_p9)   ;;  %vm565_vm2 = vcmask (!%p453_p9), 23552   ;;  %vm901_vm3 = vcmask (!%p453_p9), 154624   ;;  %s3926_s0 = sld [smem:[#allocation7_spill]] (!%p453_p9)  ;;  %v1065_v0 = vshrl.u32 (!%p453_p9), %v1064_v60, 7 }
  0x14   : > { %2731 = vmatpush3.bf16.msra.mxu1 (!%p453_p9), %v2730_v4  ;;  %v2733_v10 = vpack.c.bf16 (!%p453_p9), %v985_v8, %v984_v7  ;;  %v986_v17 = vld [vmem:[%s3906_s6 + $0x10] sm:$0x7] (!%p453_p9)  ;;  %v2791_v45 = vld [vmem:[%s3907_s7 + $0x8] sm:$0xff] (!%p453_p9)   ;;  %v2420_v46 = vld [vmem:[%s3905_s5] ss:$0 sm:$0xff] (!%p453_p9)  ;;  %vm1325_vm4 = vcmask (!%p453_p9), 261120  }
  0x15   : > { %2621 = vmatprep.subr.mxu1 (!%p453_p9), %v2870_v6  ;;  %v2871_v58 = vmov (!%p453_p9), 1966171168  }
  0x16   : > { %v1062_v59 = vunpack.c.l.s4 (!%p453_p9), %v2871_v58 }
  0x17   : > { %v557_v2 = vld [vmem:[%s3925_s2] sm:$0x7] (!%p453_p9) }
  0x18   : > { %2567 = vmatprep.subr.msk.mxu0 (!%p453_p9), %vm3917_vm0, %v557_v2  ;;  %2622 = vmatpush3.msk.msra.mxu1 (!%p453_p9), %vm3917_vm0, %v893_v5  ;;  %v1063_v63 = vunpack.c.0.s8 (!%p453_p9), %v1062_v59 }
  0x19   : > { %2568 = vmatpush3.msk.msra.mxu0 %vm3917_vm0, %v557_v2  ;;  %s3028_s2 = scalar_select %p509_p10, %s2976_s22, 1  ;;  %2732 = vmatprep.subr.bf16.mxu1 %v2868_v3 }
  0x1a   : > { %2635 = vmatprep.subr.bf16.mxu0 %v2790_v9  ;;  %v3132_v7 = vsub.s32 %v1063_v63, %v1065_v0 }
  0x1b   : > { %s3918_s30 = sshll.u32 %s3028_s2, 8  ;;  %s2383_s16 = sshll.u32 %s3028_s2, 1 }
  0x1c   : > { %s3041_s25 = scalar_lea.vmem %s3926_s0, %s3918_s30  ;;  %s517_s26 = scalar_lea.vmem %s3901_s1, %s2383_s16 }
  0x1d   : > { %v524_v11 = vld [vmem:[%s3041_s25] sm:$0xff]  ;;  %v525_v12 = vld [vmem:[%s3041_s25 + $0x8] sm:$0xff]  ;;  %v526_v13 = vld [vmem:[%s3041_s25 + $0x10] sm:$0xff]  ;;  %s3928_s17 = sshll.u32 %s3028_s2, 8  ;;  %s506_s30 = sand.u32 1, %s2858_s19  }
  0x1e   : > { %2569 = vmatprep.mubr.msk.f32.mxu0 %vm565_vm2, %v524_v11  ;;  %v3051_v14 = vld [vmem:[%s517_s26] sm:$0x3]  ;;  %v527_v15 = vld [vmem:[%s3041_s25 + $0x18] sm:$0xff]  ;;  %v529_v18 = vld [vmem:[%s3041_s25 + $0x28] sm:$0xff]  ;;  %s3447_s20 = scalar_lea.vmem %s3914_s14, %s3928_s17  ;;  %s2380_s27 = sshll.u32 %s506_s30, 8 }
  0x1f   : > { %2570 = vmatmul.mubr.msk.f32.vlgmr.msra.gmra.mrb[0].mxu0 %vm565_vm2, %v525_v12  ;;  %2624 = vmatmul.mubr.msk.f32.vlgmr.msra.gmra.mrb[0].mxu1 %vm901_vm3, %v3051_v14  ;;  %v528_v16 = vld [vmem:[%s3041_s25 + $0x20] sm:$0xff]  ;;  %v530_v19 = vld [vmem:[%s3041_s25 + $0x30] sm:$0xff]  ;;  %v531_v20 = vld [vmem:[%s3041_s25 + $0x38] sm:$0xff]  ;;  %s3784_s16 = scalar_lea.vmem [#allocation2], %s2380_s27  ;;  %s2479_s17 = sshll.u32 %s2976_s22, 12 }
  0x20   : > { %2572 = vmatprep.mubr.msk.f32.mxu0 %vm565_vm2, %v526_v13  ;;  %2734 = vmatpush3.bf16.msra.mxu1 %v2733_v10  ;;  %v532_v21 = vld [vmem:[%s3041_s25 + $0x40] sm:$0xff]  ;;  %v533_v22 = vld [vmem:[%s3041_s25 + $0x48] sm:$0xff]  ;;  %v534_v23 = vld [vmem:[%s3041_s25 + $0x50] sm:$0xff]  ;;  %s2277_s23 = sshll.u32 %s3784_s16, 4  ;;  %s3849_s2 = scalar_lea.hbm %s3915_s15, %s2479_s17  ;;  %s3851_s23 = int_to_ptr.vmem [resolvable:$true] %s2277_s23 }
  0x21   : > { %2630 = vmatprep.subr.mxu1 %v2870_v6  ;;  %2632 = vmatprep.mubr.msk.f32.mxu1 %vm2869_vm1, %v2870_v6  ;;  %v535_v24 = vld [vmem:[%s3041_s25 + $0x58] sm:$0xff]  ;;  %v536_v25 = vld [vmem:[%s3041_s25 + $0x60] sm:$0xff]  ;;  %v537_v26 = vld [vmem:[%s3041_s25 + $0x68] sm:$0xff]  ;;  %s3859_s22 = scalar_lea.sflag [#allocation3], %s506_s30  ;;  %s2804_s27 = scalar_lea.vmem %s3851_s23, 4096 }
  0x22   : > { %2636 = vmatpush3.bf16.msra.mxu0 %v2790_v9  ;;  %v538_v27 = vld [vmem:[%s3041_s25 + $0x70] sm:$0xff]  ;;  %v539_v28 = vld [vmem:[%s3041_s25 + $0x78] sm:$0xff]  ;;  %v540_v29 = vld [vmem:[%s3041_s25 + $0x80] sm:$0xff]  ;;  %p2805_p11 = scmp.ne.s32.totalorder %s3851_s23, %s2804_s27  ;;  %s2872_s26 = smov [#allocation2]  }
  0x23   : > { %2573 = vmatmul.mubr.msk.f32.gmra.mrb[2].mxu0 %vm565_vm2, %v527_v15  ;;  %v541_v30 = vld [vmem:[%s3041_s25 + $0x88] sm:$0xff]  ;;  %v542_v31 = vld [vmem:[%s3041_s25 + $0x90] sm:$0xff]  ;;  %v543_v32 = vld [vmem:[%s3041_s25 + $0x98] sm:$0xff]  ;;  %2637 = vmatprep.subr.bf16.mxu0 %v2791_v45 }
  0x24   : > { %2575 = vmatprep.mubr.msk.f32.mxu0 %vm565_vm2, %v528_v16  ;;  %2631 = vmatpush3.msk.msra.mxu1 %vm3917_vm0, %v986_v17  ;;  %v544_v33 = vld [vmem:[%s3041_s25 + $0xa0] sm:$0xff]  ;;  %v545_v34 = vld [vmem:[%s3041_s25 + $0xa8] sm:$0xff]  ;;  %v546_v35 = vld [vmem:[%s3041_s25 + $0xb0] sm:$0xff]  ;;  %p2806_p12 = pnand %p2805_p11, %p2993_p5 }
  0x25   : > { %2633 = vmatmul.mubr.msk.f32.vlgmr.msra.gmra.mrb[2].mxu1 %vm901_vm3, %v3051_v14  ;;  %2741 = vmatprep.subr.bf16.mxu1 %v2790_v9  ;;  %v547_v36 = vld [vmem:[%s3041_s25 + $0xb8] sm:$0xff]  ;;  %v548_v37 = vld [vmem:[%s3041_s25 + $0xc0] sm:$0xff]  ;;  %v549_v38 = vld [vmem:[%s3041_s25 + $0xc8] sm:$0xff] }
  0x26   : > { %2743 = vmatpush3.bf16.msra.mxu1 %v2790_v9  ;;  %v550_v39 = vld [vmem:[%s3041_s25 + $0xd0] sm:$0xff]  ;;  %v551_v40 = vld [vmem:[%s3041_s25 + $0xd8] sm:$0xff]  ;;  %v552_v41 = vld [vmem:[%s3041_s25 + $0xe0] sm:$0xff]  ;;  %2638 = vmatpush3.bf16.msra.mxu0 %v2791_v45  ;;  %p2807_p13 = pneg %p2806_p12 }
  0x27   : > { %2576 = vmatmul.mubr.msk.f32.gmra.mrb[4].mxu0 %vm565_vm2, %v529_v18  ;;  %v553_v42 = vld [vmem:[%s3041_s25 + $0xe8] sm:$0xff]  ;;  %v554_v43 = vld [vmem:[%s3041_s25 + $0xf0] sm:$0xff]  ;;  %v555_v44 = vld [vmem:[%s3041_s25 + $0xf8] sm:$0xff]  ;;  %2742 = vmatprep.subr.bf16.mxu1 %v2791_v45  ;;  %s2808_s25 = sshll.u32 %s2872_s26, 4  ;;  %s2809_s25 = int_to_ptr.vmem [resolvable:$false] %s2808_s25 }
  0x28   : > { %2578 = vmatprep.mubr.msk.f32.mxu0 %vm565_vm2, %v530_v19  ;;  %2735 = vmatprep.subr.bf16.mxu0 %v2868_v3  ;;  %v3138_v15 = vld [vmem:[%s3903_s3] ss:$0 sm:$0xff]  ;;  %s2810_s17 = scalar_lea.vmem %s2809_s25, 8192  ;;  %p2811_p0 = scmp.lt.s32.totalorder %s3851_s23, %s2809_s25 }
  0x29   : > { %p2812_p1 = scmp.lt.s32.totalorder %s2810_s17, %s2804_s27 }
  0x2a   : > { %2744 = vmatpush3.bf16.msra.mxu1 %v2791_v45 }
  0x2b   : > { %2579 = vmatmul.mubr.msk.f32.gmra.mrb[6].mxu0 %vm565_vm2, %v531_v20  ;;  %v3142_v20 = vsub.s32 0, %v1065_v0  ;;  %p2813_p2 = por %p2812_p1, %p2811_p0 }
  0x2c   : > { %2581 = vmatprep.mubr.msk.f32.mxu0 %vm565_vm2, %v532_v21 }
  0x2d   : > { %p2814_p3 = pnand %p2813_p2, %p2807_p13 }
  0x2f   : > { %2582 = vmatmul.mubr.msk.f32.gmra.mrb[8].mxu0 %vm565_vm2, %v533_v22 }
  0x30   : > { %2584 = vmatprep.mubr.msk.f32.mxu0 %vm565_vm2, %v534_v23 }
  0x33   : > { %2585 = vmatmul.mubr.msk.f32.gmra.mrb[10].mxu0 %vm565_vm2, %v535_v24 }
  0x34   : > { %2587 = vmatprep.mubr.msk.f32.mxu0 %vm565_vm2, %v536_v25 }
  0x37   : > { %2588 = vmatmul.mubr.msk.f32.gmra.mrb[12].mxu0 %vm565_vm2, %v537_v26 }
  0x38   : > { %2590 = vmatprep.mubr.msk.f32.mxu0 %vm565_vm2, %v538_v27 }
  0x3b   : > { %2591 = vmatmul.mubr.msk.f32.gmra.mrb[14].mxu0 %vm565_vm2, %v539_v28 }
  0x3c   : > { %2593 = vmatprep.mubr.msk.f32.mxu0 %vm565_vm2, %v540_v29 }
  0x3f   : > { %2594 = vmatmul.mubr.msk.f32.gmra.mrb[16].mxu0 %vm565_vm2, %v541_v30 }
  0x40   : > { %2596 = vmatprep.mubr.msk.f32.mxu0 %vm565_vm2, %v542_v31 }
  0x43   : > { %2597 = vmatmul.mubr.msk.f32.gmra.mrb[18].mxu0 %vm565_vm2, %v543_v32 }
  0x44   : > { %2599 = vmatprep.mubr.msk.f32.mxu0 %vm565_vm2, %v544_v33 }
  0x47   : > { %2600 = vmatmul.mubr.msk.f32.gmra.mrb[20].mxu0 %vm565_vm2, %v545_v34 }
  0x48   : > { %2602 = vmatprep.mubr.msk.f32.mxu0 %vm565_vm2, %v546_v35 }
  0x4b   : > { %2603 = vmatmul.mubr.msk.f32.gmra.mrb[22].mxu0 %vm565_vm2, %v547_v36 }
  0x4c   : > { %2605 = vmatprep.mubr.msk.f32.mxu0 %vm565_vm2, %v548_v37 }
  0x4f   : > { %2606 = vmatmul.mubr.msk.f32.gmra.mrb[24].mxu0 %vm565_vm2, %v549_v38 }
  0x50   : > { %2608 = vmatprep.mubr.msk.f32.mxu0 %vm565_vm2, %v550_v39 }
  0x53   : > { %2609 = vmatmul.mubr.msk.f32.gmra.mrb[26].mxu0 %vm565_vm2, %v551_v40 }
  0x54   : > { %2611 = vmatprep.mubr.msk.f32.mxu0 %vm565_vm2, %v552_v41 }
  0x57   : > { %2612 = vmatmul.mubr.msk.f32.gmra.mrb[28].mxu0 %vm565_vm2, %v553_v42 }
  0x58   : > { %2614 = vmatprep.mubr.msk.f32.mxu0 %vm565_vm2, %v554_v43 }
  0x5b   : > { %2615 = vmatmul.mubr.msk.f32.gmra.mrb[30].mxu0 %vm565_vm2, %v555_v44 }
  0xf2   : > { %v974_v47 = vpop.f32.mrb[0].mxu1  ;;  %v2571_v48 = vpop.f32.mrb[0].mxu0 }
  0xf3   : > { %v975_v49 = vadd.f32 %v2420_v46, %v974_v47  ;;  %v2625_v50 = vpop.f32.mrb[1].mxu1  ;;  %v732_v51 = vpop.f32.mrb[1].mxu0  ;;  %v738_v21 = vadd.f32 %v2571_v48, %v3138_v15 }
  0xf4   : > { %v733_v24 = vadd.f32 %v3138_v15, %v732_v51 }
  0xf5   : > { %v2423_v52 = vmul.f32 -1.442695, %v975_v49 }
  0xf6   : > { %v2574_v53 = vpop.f32.mrb[2].mxu0 }
  0xf7   : > { %2796 = vpow2.f32 %v2423_v52  ;;  %v742_v54 = vpop.f32.mrb[3].mxu0  ;;  %v748_v25 = vadd.f32 %v2574_v53, %v3138_v15 }
  0xf8   : > { %v1056_v55 = vpop.f32.mrb[2].mxu1  ;;  %v743_v26 = vadd.f32 %v3138_v15, %v742_v54 }
  0xf9   : > { %v2634_v56 = vpop.f32.mrb[3].mxu1  ;;  %v1132_v9 = vrot.slane %v1056_v55, %v3132_v7 }
  0xfa   : > { %v2577_v57 = vpop.f32.mrb[4].mxu0 }
  0xfb   : > { %v752_v61 = vpop.f32.mrb[5].mxu0  ;;  %v1133_v12 = vcombine.high %v1132_v9, %v1132_v9  ;;  %v1140_v17 = vrot.slane %v1132_v9, %v3132_v7  ;;  %v758_v28 = vadd.f32 %v2577_v57, %v3138_v15 }
  0xfc   : > { %v753_v29 = vadd.f32 %v3138_v15, %v752_v61 }
  0xfd   : > { %v1147_v18 = vrot.slane %v1133_v12, %v3132_v7  ;;  %v3153_v31 = vrot.slane %v1140_v17, %v3142_v20 }
  0xfe   : > { %v2580_v62 = vpop.f32.mrb[6].mxu0 }
  0xff   : > { %v762_v1 = vpop.f32.mrb[7].mxu0  ;;  %v768_v30 = vadd.f32 %v2580_v62, %v3138_v15  ;;  %v3158_v35 = vrot.slane %v1147_v18, %v3142_v20  ;;  %v3211_v18 = vld [vmem:[%s3909_s9] sm:$0xff] }
 0x100   : > { %v763_v34 = vadd.f32 %v3138_v15, %v762_v1 }
 0x101   : > { %v2797_v2 = vpop.eup %2796 }
 0x102   : > { %v981_v4 = vadd.f32 1.0, %v2797_v2  ;;  %v2583_v5 = vpop.f32.mrb[8].mxu0 }
 0x103   : > { %v772_v8 = vpop.f32.mrb[9].mxu0  ;;  %v778_v36 = vadd.f32 %v2583_v5, %v3138_v15 }
 0x104   : > { %2798 = vrcp.f32 %v981_v4  ;;  %v773_v37 = vadd.f32 %v3138_v15, %v772_v8 }
 0x106   : > { %v2586_v10 = vpop.f32.mrb[10].mxu0 }
 0x107   : > { %v782_v11 = vpop.f32.mrb[11].mxu0  ;;  %v788_v38 = vadd.f32 %v2586_v10, %v3138_v15 }
 0x108   : > { %v783_v39 = vadd.f32 %v3138_v15, %v782_v11 }
 0x10a   : > { %v2589_v13 = vpop.f32.mrb[12].mxu0 }
 0x10b   : > { %v792_v16 = vpop.f32.mrb[13].mxu0  ;;  %v798_v43 = vadd.f32 %v2589_v13, %v3138_v15 }
 0x10c   : > { %v793_v44 = vadd.f32 %v3138_v15, %v792_v16 }
 0x10e   : > { %v2799_v19 = vpop.eup %2798  ;;  %v2592_v22 = vpop.f32.mrb[14].mxu0 }
 0x10f   : > { %v1067_v23 = vrot.slane %v2799_v19, %v3132_v7  ;;  %v802_v27 = vpop.f32.mrb[15].mxu0  ;;  %v808_v46 = vadd.f32 %v2592_v22, %v3138_v15  ;;  %v3216_v19 = vld [vmem:[%s3909_s9 + $0x8] sm:$0xff] }
 0x110   : > { %v803_v47 = vadd.f32 %v3138_v15, %v802_v27 }
 0x111   : > { %v1068_v32 = vcombine.high %v1067_v23, %v1067_v23  ;;  %v1075_v33 = vrot.slane %v1067_v23, %v3132_v7 }
 0x112   : > { %v2595_v40 = vpop.f32.mrb[16].mxu0 }
 0x113   : > { %v1082_v41 = vrot.slane %v1068_v32, %v3132_v7  ;;  %v1086_v42 = vrot.slane %v1075_v33, %v3142_v20  ;;  %v812_v45 = vpop.f32.mrb[17].mxu0  ;;  %v818_v48 = vadd.f32 %v2595_v40, %v3138_v15 }
 0x114   : > { %v813_v49 = vadd.f32 %v3138_v15, %v812_v45 }
 0x115   : > { %v3173_v50 = vrot.slane %v1082_v41, %v3142_v20  ;;  %v1094_v51 = vmul.f32 %v1086_v42, %v738_v21  ;;  %v1093_v52 = vmul.f32 %v1086_v42, %v733_v24  ;;  %v3175_v53 = vmul.f32 %v1086_v42, %v748_v25 }
 0x116   : > { %v3177_v54 = vmul.f32 %v1086_v42, %v743_v26  ;;  %v3179_v55 = vmul.f32 %v1086_v42, %v758_v28  ;;  %v3181_v56 = vmul.f32 %v1086_v42, %v753_v29  ;;  %v3183_v57 = vmul.f32 %v1086_v42, %v768_v30  ;;  %v2598_v58 = vpop.f32.mrb[18].mxu0 }
 0x117   : > { %v3185_v59 = vmul.f32 %v1086_v42, %v763_v34  ;;  %v3187_v60 = vmul.f32 %v1086_v42, %v778_v36  ;;  %v3189_v61 = vmul.f32 %v1086_v42, %v773_v37  ;;  %v3191_v62 = vmul.f32 %v1086_v42, %v788_v38  ;;  %v822_v63 = vpop.f32.mrb[19].mxu0 }
 0x118   : > { %v3193_v0 = vmul.f32 %v1086_v42, %v783_v39  ;;  %v3195_v1 = vmul.f32 %v1086_v42, %v798_v43  ;;  %v1105_v2 = vmul.f32 %v1086_v42, %v793_v44  ;;  %v1108_v4 = vmul.f32 %v1086_v42, %v808_v46 }
 0x119   : > { %v1107_v5 = vmul.f32 %v1086_v42, %v803_v47  ;;  %v1110_v8 = vmul.f32 %v3173_v50, %v818_v48  ;;  %v1109_v9 = vmul.f32 %v3173_v50, %v813_v49  ;;  %v828_v10 = vadd.f32 %v2598_v58, %v3138_v15 }
 0x11a   : > { %v3201_v11 = vadd.f32 %v3153_v31, %v1105_v2  ;;  %v3204_v12 = vadd.f32 %v3153_v31, %v1108_v4  ;;  %v823_v13 = vadd.f32 %v3138_v15, %v822_v63  ;;  %v2601_v16 = vpop.f32.mrb[20].mxu0  ;;  %v1158_v17 = vadd.f32 %v3153_v31, %v1093_v52 }
 0x11b   : > { %v3219_v21 = vadd.f32 %v3153_v31, %v1107_v5  ;;  %v1175_v22 = vadd.f32 %v3158_v35, %v1110_v8  ;;  %v1174_v23 = vadd.f32 %v3158_v35, %v1109_v9  ;;  %v1112_v24 = vmul.f32 %v3173_v50, %v828_v10  ;;  %v832_v25 = vpop.f32.mrb[21].mxu0 }
 0x11c   : > { %v2736_v26 = vpack.c.bf16 %v3216_v19, %v3211_v18  ;;  %v3227_v27 = vmul.f32 0.01, %v3201_v11  ;;  %v1111_v30 = vmul.f32 %v3173_v50, %v823_v13  ;;  %v838_v33 = vadd.f32 %v2601_v16, %v3138_v15 }
 0x11d   : > { %v1238_v28 = vmul.f32 0.01, %v1174_v23  ;;  %v1177_v29 = vadd.f32 %v3158_v35, %v1112_v24  ;;  %v833_v34 = vadd.f32 %v3138_v15, %v832_v25  ;;  %v1159_v37 = vadd.f32 %v3153_v31, %v1094_v51 }
 0x11e   : > { %v2604_v32 = vpop.f32.mrb[22].mxu0  ;;  %v1176_v40 = vadd.f32 %v3158_v35, %v1111_v30  ;;  %vm1190_vm6 = vcmp.ge.f32.partialorder %v1158_v17, 0.0  ;;  %v1114_v41 = vmul.f32 %v3173_v50, %v838_v33  ;;  %v1222_v46 = vmul.f32 0.01, %v1158_v17 }
 0x11f   : > { %v848_v36 = vadd.f32 %v2604_v32, %v3138_v15  ;;  %v842_v38 = vpop.f32.mrb[23].mxu0  ;;  %vm1209_vm5 = vcmp.ge.f32.partialorder %v1177_v29, 0.0  ;;  %v1241_v39 = vmul.f32 0.01, %v1177_v29  ;;  %v1113_v42 = vmul.f32 %v3173_v50, %v833_v34 }
 0x120   : > { %vm1191_vm7 = vcmp.ge.f32.partialorder %v1159_v37, 0.0  ;;  %vm1208_vm8 = vcmp.ge.f32.partialorder %v1176_v40, 0.0  ;;  %v1240_v45 = vmul.f32 0.01, %v1176_v40  ;;  %v3242_v48 = vadd.f32 %v3158_v35, %v1114_v41 }
 0x121   : > { %v1116_v43 = vmul.f32 %v3173_v50, %v848_v36  ;;  %v3239_v44 = vsel %vm1209_vm5, %v1177_v29, %v1241_v39  ;;  %v3245_v49 = vadd.f32 %v3158_v35, %v1113_v42  ;;  %v1223_v52 = vmul.f32 0.01, %v1159_v37 }
 0x122   : > { %v2607_v47 = vpop.f32.mrb[24].mxu0  ;;  %v1272_v63 = vsel %vm1208_vm8, %v1176_v40, %v1240_v45  ;;  %v1254_v2 = vsel %vm1190_vm6, %v1158_v17, %v1222_v46  ;;  %v843_v4 = vadd.f32 %v3138_v15, %v842_v38  ;;  %v1160_v5 = vadd.f32 %v3153_v31, %v3177_v54 }
 0x123   : > { %v3248_v51 = vadd.f32 %v3158_v35, %v1116_v43  ;;  %v852_v58 = vpop.f32.mrb[25].mxu0  ;;  %v3255_v8 = vmul.f32 0.01, %v3204_v12  ;;  %v1239_v9 = vmul.f32 0.01, %v1175_v22  ;;  %vm1206_vm9 = vcmp.ge.f32.partialorder %v1174_v23, 0.0 }
 0x124   : > { %v1295_v10 = vpack.c.bf16 %v3239_v44, %v1272_v63  ;;  %v3259_v13 = vmul.f32 0.01, %v3219_v21  ;;  %vm1207_vm10 = vcmp.ge.f32.partialorder %v1175_v22, 0.0  ;;  %v3262_v16 = vmul.f32 0.01, %v3242_v48 }
 0x125   : > { %v1255_v17 = vsel %vm1191_vm7, %v1159_v37, %v1223_v52  ;;  %v1115_v54 = vmul.f32 %v3173_v50, %v843_v4  ;;  %v1161_v29 = vadd.f32 %v3153_v31, %v3175_v53  ;;  %vm1192_vm11 = vcmp.ge.f32.partialorder %v1160_v5, 0.0 }
 0x126   : > { %v2610_v24 = vpop.f32.mrb[26].mxu0  ;;  %v1286_v25 = vpack.c.bf16 %v1255_v17, %v1254_v2  ;;  %v1224_v32 = vmul.f32 0.01, %v1160_v5  ;;  %v1162_v33 = vadd.f32 %v3153_v31, %v3181_v56  ;;  %v1163_v34 = vadd.f32 %v3153_v31, %v3179_v55 }
 0x127   : > { %v862_v30 = vpop.f32.mrb[27].mxu0  ;;  %v1270_v36 = vsel %vm1206_vm9, %v1174_v23, %v1238_v28  ;;  %v3274_v37 = vadd.f32 %v3158_v35, %v1115_v54  ;;  %vm1193_vm12 = vcmp.ge.f32.partialorder %v1161_v29, 0.0  ;;  %v1225_v38 = vmul.f32 0.01, %v1161_v29 }
 0x128   : > { %2639 = vmatprep.mubr.msk.bf16.mxu0 %vm1325_vm4, %v1286_v25  ;;  %v1271_v39 = vsel %vm1207_vm10, %v1175_v22, %v1239_v9  ;;  %vm1211_vm13 = vcmp.ge.f32.partialorder %v3242_v48, 0.0  ;;  %v1256_v53 = vsel %vm1192_vm11, %v1160_v5, %v1224_v32  ;;  %vm1194_vm14 = vcmp.ge.f32.partialorder %v1162_v33, 0.0 }
 0x129   : > { %vm1195_vm15 = vcmp.ge.f32.partialorder %v1163_v34, 0.0  ;;  %v1226_v40 = vmul.f32 0.01, %v1162_v33  ;;  %vm1210_vm2 = vcmp.ge.f32.partialorder %v3245_v49, 0.0  ;;  %v1242_v55 = vmul.f32 0.01, %v3245_v49 }
 0x12a   : > { %v2613_v56 = vpop.f32.mrb[28].mxu0  ;;  %v1257_v23 = vsel %vm1193_vm12, %v1161_v29, %v1225_v38  ;;  %v1227_v28 = vmul.f32 0.01, %v1163_v34  ;;  %v1294_v44 = vpack.c.bf16 %v1271_v39, %v1270_v36  ;;  %v858_v45 = vadd.f32 %v2607_v47, %v3138_v15 }
 0x12b   : > { %v872_v41 = vpop.f32.mrb[29].mxu0  ;;  %v1287_v42 = vpack.c.bf16 %v1257_v23, %v1256_v53  ;;  %v1258_v43 = vsel %vm1194_vm14, %v1162_v33, %v1226_v40  ;;  %v853_v46 = vadd.f32 %v3138_v15, %v852_v58  ;;  %v868_v52 = vadd.f32 %v2610_v24, %v3138_v15 }
 0x12c   : > { %v1259_v22 = vsel %vm1195_vm15, %v1163_v34, %v1227_v28  ;;  %v863_v63 = vadd.f32 %v3138_v15, %v862_v30  ;;  %vm1213_vm5 = vcmp.ge.f32.partialorder %v3248_v51, 0.0  ;;  %2655 = vmatprep.mubr.msk.bf16.mxu1 %vm1325_vm4, %v1294_v44  ;;  %v1118_v4 = vmul.f32 %v3173_v50, %v858_v45 }
 0x12d   : > { %2640 = vmatmul.mubr.msk.bf16.vlgmr.msra.gmra.mrb[32].mxu0 %vm1325_vm4, %v1287_v42  ;;  %v1288_v2 = vpack.c.bf16 %v1259_v22, %v1258_v43  ;;  %v1164_v5 = vadd.f32 %v3153_v31, %v3185_v59  ;;  %v1245_v9 = vmul.f32 0.01, %v3248_v51  ;;  %v1117_v58 = vmul.f32 %v3173_v50, %v853_v46  ;;  %2656 = vmatmul.mubr.msk.bf16.vlgmr.msra.gmra.mrb[4].mxu1 %vm1325_vm4, %v1295_v10 }
 0x12e   : > { %v2616_v47 = vpop.f32.mrb[30].mxu0  ;;  %2737 = vmatpush3.bf16.msra.mxu0 %v2736_v26  ;;  %v1120_v17 = vmul.f32 %v3173_v50, %v868_v52  ;;  %v1119_v24 = vmul.f32 %v3173_v50, %v863_v63  ;;  %vm1212_vm6 = vcmp.ge.f32.partialorder %v3274_v37, 0.0  ;;  %v3301_v59 = vadd.f32 %v3158_v35, %v1118_v4  ;;  %v1570_v26 = vld [vmem:[%s3909_s9 + $0x10] sm:$0x7] }
 0x12f   : > { %v882_v25 = vpop.f32.mrb[31].mxu0  ;;  %2643 = vmatprep.mubr.msk.bf16.mxu0 %vm1325_vm4, %v1288_v2  ;;  %v1165_v18 = vadd.f32 %v3153_v31, %v3183_v57  ;;  %v1228_v19 = vmul.f32 0.01, %v1164_v5  ;;  %2675 = vmatprep.subr.mxu0 %v2870_v6  ;;  %v1182_v10 = vadd.f32 %v3158_v35, %v1117_v58  ;;  %vm1196_vm7 = vcmp.ge.f32.partialorder %v1164_v5, 0.0 }
 0x130   : > { %v3311_v54 = vadd.f32 %v3158_v35, %v1120_v17  ;;  %v3314_v29 = vadd.f32 %v3158_v35, %v1119_v24  ;;  %v1244_v30 = vmul.f32 0.01, %v3274_v37  ;;  %v1274_v32 = vsel %vm1210_vm2, %v3245_v49, %v1242_v55 }
 0x131   : > { %vm1197_vm8 = vcmp.ge.f32.partialorder %v1165_v18, 0.0  ;;  %v1229_v57 = vmul.f32 0.01, %v1165_v18  ;;  %vm1215_vm9 = vcmp.ge.f32.partialorder %v3301_v59, 0.0  ;;  %v1247_v33 = vmul.f32 0.01, %v3301_v59 }
 0x132   : > { %vm1214_vm10 = vcmp.ge.f32.partialorder %v1182_v10, 0.0  ;;  %v1246_v34 = vmul.f32 0.01, %v1182_v10  ;;  %2676 = vmatpush3.msk.msra.mxu0 %vm3917_vm0, %v1570_v26  ;;  %v3324_v36 = vmul.f32 0.01, %v3311_v54  ;;  %v1260_v39 = vsel %vm1196_vm7, %v1164_v5, %v1228_v19 }
 0x133   : > { %v3327_v38 = vmul.f32 0.01, %v3314_v29  ;;  %v1261_v53 = vsel %vm1197_vm8, %v1165_v18, %v1229_v57  ;;  %2738 = vmatprep.subr.bf16.mxu0 %v2868_v3  ;;  %v1275_v49 = vsel %vm1211_vm13, %v3242_v48, %v3262_v16  ;;  %v1166_v55 = vadd.f32 %v3153_v31, %v3189_v61 }
 0x134   : > { %v1289_v40 = vpack.c.bf16 %v1261_v53, %v1260_v39  ;;  %v1167_v23 = vadd.f32 %v3153_v31, %v3187_v60  ;;  %vm1202_vm11 = vcmp.ge.f32.partialorder %v3201_v11, 0.0  ;;  %vm1216_vm12 = vcmp.ge.f32.partialorder %v3314_v29, 0.0  ;;  %v1659_v53 = vld [vmem:[%s3911_s11 + $0x10] sm:$0x7] }
 0x135   : > { %v1296_v28 = vpack.c.bf16 %v1275_v49, %v1274_v32  ;;  %v878_v42 = vadd.f32 %v2613_v56, %v3138_v15  ;;  %v873_v3 = vadd.f32 %v3138_v15, %v872_v41  ;;  %v1276_v43 = vsel %vm1212_vm6, %v3274_v37, %v1244_v30  ;;  %v2793_v49 = vld [vmem:[%s3912_s12 + $0x8] sm:$0xff]  }
 0x136   : > { %vm1205_vm13 = vcmp.ge.f32.partialorder %v3204_v12, 0.0  ;;  %vm1204_vm14 = vcmp.ge.f32.partialorder %v3219_v21, 0.0  ;;  %vm1217_vm15 = vcmp.ge.f32.partialorder %v3311_v54, 0.0  ;;  %2644 = vmatmul.mubr.msk.bf16.gmra.mrb[36].mxu0 %vm1325_vm4, %v1289_v40  ;;  %vm1198_vm2 = vcmp.ge.f32.partialorder %v1166_v55, 0.0  ;;  %v2792_v40 = vld [vmem:[%s3912_s12] sm:$0xff]  }
 0x137   : > { %vm1199_vm7 = vcmp.ge.f32.partialorder %v1167_v23, 0.0  ;;  %v1230_v60 = vmul.f32 0.01, %v1166_v55  ;;  %v1231_v61 = vmul.f32 0.01, %v1167_v23  ;;  %2659 = vmatprep.mubr.msk.bf16.mxu1 %vm1325_vm4, %v1296_v28  ;;  %v1122_v48 = vmul.f32 %v3173_v50, %v878_v42  ;;  %2689 = vmatprep.subr.bf16.mxu1 %v2792_v40 }
 0x138   : > { %v1121_v16 = vmul.f32 %v3173_v50, %v873_v3  ;;  %v1277_v37 = vsel %vm1213_vm5, %v3248_v51, %v1245_v9  ;;  %v888_v56 = vadd.f32 %v2616_v47, %v3138_v15  ;;  %v883_v22 = vadd.f32 %v3138_v15, %v882_v25  ;;  %2690 = vmatpush3.bf16.msra.mxu1 %v2792_v40 }
 0x139   : > { %v1262_v41 = vsel %vm1198_vm2, %v1166_v55, %v1230_v60  ;;  %v1263_v44 = vsel %vm1199_vm7, %v1167_v23, %v1231_v61  ;;  %v1297_v45 = vpack.c.bf16 %v1277_v37, %v1276_v43  ;;  %v1187_v52 = vadd.f32 %v3158_v35, %v1122_v48  ;;  %2691 = vmatprep.subr.bf16.mxu1 %v2793_v49  ;;  %v3440_v55 = vld [vmem:[%s3908_s8] ss:$0 sm:$0xff] }
 0x13a   : > { %v1290_v46 = vpack.c.bf16 %v1263_v44, %v1262_v41  ;;  %v1186_v63 = vadd.f32 %v3158_v35, %v1121_v16  ;;  %v1124_v2 = vmul.f32 %v3173_v50, %v888_v56  ;;  %v1123_v4 = vmul.f32 %v3173_v50, %v883_v22 }
 0x13b   : > { %2660 = vmatmul.mubr.msk.bf16.gmra.mrb[8].mxu1 %vm1325_vm4, %v1297_v45  ;;  %v1168_v51 = vadd.f32 %v3153_v31, %v3193_v0  ;;  %v1169_v5 = vadd.f32 %v3153_v31, %v3191_v62  ;;  %v1278_v47 = vsel %vm1214_vm10, %v1182_v10, %v1246_v34  ;;  %vm1219_vm5 = vcmp.ge.f32.partialorder %v1187_v52, 0.0 }
 0x13c   : > { %2647 = vmatprep.mubr.msk.bf16.mxu0 %vm1325_vm4, %v1290_v46  ;;  %v1251_v15 = vmul.f32 0.01, %v1187_v52  ;;  %vm1218_vm6 = vcmp.ge.f32.partialorder %v1186_v63, 0.0  ;;  %v1250_v9 = vmul.f32 0.01, %v1186_v63  ;;  %v1189_v58 = vadd.f32 %v3158_v35, %v1124_v2  ;;  %2692 = vmatpush3.bf16.msra.mxu1 %v2793_v49 }
 0x13d   : > { %v1188_v17 = vadd.f32 %v3158_v35, %v1123_v4  ;;  %vm1200_vm8 = vcmp.ge.f32.partialorder %v1168_v51, 0.0  ;;  %vm1201_vm2 = vcmp.ge.f32.partialorder %v1169_v5, 0.0  ;;  %v1232_v50 = vmul.f32 0.01, %v1168_v51 }
 0x13e   : > { %v1233_v24 = vmul.f32 0.01, %v1169_v5  ;;  %v1279_v62 = vsel %vm1215_vm9, %v3301_v59, %v1247_v33  ;;  %v1171_v0 = vadd.f32 %v3153_v31, %v3195_v1  ;;  %vm1221_vm10 = vcmp.ge.f32.partialorder %v1189_v58, 0.0 }
 0x13f   : > { %v1253_v25 = vmul.f32 0.01, %v1189_v58  ;;  %vm1220_vm7 = vcmp.ge.f32.partialorder %v1188_v17, 0.0  ;;  %v1252_v18 = vmul.f32 0.01, %v1188_v17  ;;  %v1264_v19 = vsel %vm1200_vm8, %v1168_v51, %v1232_v50 }
 0x140   : > { %v1265_v26 = vsel %vm1201_vm2, %v1169_v5, %v1233_v24  ;;  %v1298_v10 = vpack.c.bf16 %v1279_v62, %v1278_v47  ;;  %vm1203_vm0 = vcmp.ge.f32.partialorder %v1171_v0, 0.0  ;;  %v1235_v30 = vmul.f32 0.01, %v1171_v0 }
 0x141   : > { %v1291_v35 = vpack.c.bf16 %v1265_v26, %v1264_v19  ;;  %v1266_v57 = vsel %vm1202_vm11, %v3201_v11, %v3227_v27  ;;  %v1280_v31 = vsel %vm1216_vm12, %v3314_v29, %v3327_v38  ;;  %v1281_v1 = vsel %vm1217_vm15, %v3311_v54, %v3324_v36 }
 0x142   : > { %2663 = vmatprep.mubr.msk.bf16.mxu1 %vm1325_vm4, %v1298_v10  ;;  %v1268_v59 = vsel %vm1204_vm14, %v3219_v21, %v3259_v13  ;;  %v1269_v11 = vsel %vm1205_vm13, %v3204_v12, %v3255_v8  ;;  %v1282_v27 = vsel %vm1218_vm6, %v1186_v63, %v1250_v9  ;;  %v1267_v29 = vsel %vm1203_vm0, %v1171_v0, %v1235_v30  ;;  %v1657_v12 = vld [vmem:[%s3911_s11] sm:$0xff]  ;;  %v1658_v8 = vld [vmem:[%s3911_s11 + $0x8] sm:$0xff] }
 0x143   : > { %2648 = vmatmul.mubr.msk.bf16.gmra.mrb[40].mxu0 %vm1325_vm4, %v1291_v35  ;;  %v1299_v32 = vpack.c.bf16 %v1281_v1, %v1280_v31  ;;  %v1293_v33 = vpack.c.bf16 %v1269_v11, %v1268_v59  ;;  %v1283_v34 = vsel %vm1219_vm5, %v1187_v52, %v1251_v15  ;;  %v1292_v54 = vpack.c.bf16 %v1267_v29, %v1266_v57 }
 0x144   : > { %v1300_v36 = vpack.c.bf16 %v1283_v34, %v1282_v27  ;;  %v1284_v38 = vsel %vm1220_vm7, %v1188_v17, %v1252_v18  ;;  %v1285_v21 = vsel %vm1221_vm10, %v1189_v58, %v1253_v25  ;;  %v2739_v39 = vpack.c.bf16 %v1658_v8, %v1657_v12 }
 0x145   : > { %2664 = vmatmul.mubr.msk.bf16.gmra.mrb[12].mxu1 %vm1325_vm4, %v1299_v32  ;;  %v1301_v13 = vpack.c.bf16 %v1285_v21, %v1284_v38  ;;  %2651 = vmatprep.mubr.msk.bf16.mxu0 %vm1325_vm4, %v1292_v54  ;;  %vm3927_vm0 = vcmask 1042432  }
 0x146   : > { %2667 = vmatprep.mubr.msk.bf16.mxu1 %vm1325_vm4, %v1300_v36 }
 0x14b   : > { %2652 = vmatmul.mubr.msk.bf16.gmra.mrb[44].mxu0 %vm1325_vm4, %v1293_v33 }
 0x14c   : > { %2677 = vmatprep.mubr.msk.f32.mxu0 %vm2869_vm1, %v2870_v6 }
 0x14d   : > { %2668 = vmatmul.mubr.msk.bf16.gmra.mrb[16].mxu1 %vm1325_vm4, %v1301_v13 }
 0x153   : > { %2678 = vmatmul.mubr.msk.f32.vlgmr.msra.gmra.mrb[48].mxu0 %vm901_vm3, %v3051_v14 }
 0x154   : > { %2740 = vmatpush3.bf16.msra.mxu0 %v2739_v39  ;;  %2686 = vmatprep.mubr.msk.f32.mxu0 %vm2869_vm1, %v2870_v6  ;;  %vm1535_vm1 = vcmask 523264  }
 0x155   : > { %2684 = vmatprep.subr.mxu0 %v2870_v6  ;;  %v2794_v6 = vld [vmem:[%s3912_s12 + $0x10] sm:$0xff]  }
 0x156   : > { %2693 = vmatprep.subr.bf16.mxu1 %v2794_v6 }
 0x157   : > { %2694 = vmatpush3.bf16.msra.mxu1 %v2794_v6 }
 0x158   : > { %2685 = vmatpush3.msk.msra.mxu0 %vm3927_vm0, %v1659_v53 }
 0x159   : > { %2687 = vmatmul.mubr.msk.f32.vlgmr.msra.gmra.mrb[50].mxu0 %vm901_vm3, %v3051_v14  ;;  %v2795_v14 = vld [vmem:[%s3912_s12 + $0x18] sm:$0xff]  }
 0x15a   : > { %2695 = vmatprep.subr.bf16.mxu1 %v2795_v14 }
 0x15b   : > { %2696 = vmatpush3.bf16.msra.mxu1 %v2795_v14 }
 0x200   : > { %v2641_v23 = vpop.f32.mrb[32].mxu0  ;;  %v2657_v3 = vpop.f32.mrb[4].mxu1 }
 0x201   : > { %v3450_v28 = vadd.f32 %v2641_v23, %v3440_v55  ;;  %v1408_v42 = vpop.f32.mrb[33].mxu0  ;;  %v3456_v61 = vadd.f32 %v2657_v3, %v3440_v55  ;;  %v1472_v48 = vpop.f32.mrb[5].mxu1 }
 0x202   : > { %v3453_v43 = vadd.f32 %v3440_v55, %v1408_v42  ;;  %v2642_v60 = vpop.f32.mrb[34].mxu0  ;;  %v3465_v56 = vadd.f32 %v3440_v55, %v1472_v48  ;;  %v2658_v41 = vpop.f32.mrb[6].mxu1 }
 0x203   : > { %1538 = vst.msk [vmem:[%s3447_s20 + $0x10] sm:$0xff] %vm1535_vm1, %v3450_v28  ;;  %v3462_v16 = vadd.f32 %v2642_v60, %v3440_v55  ;;  %v1411_v37 = vpop.f32.mrb[35].mxu0  ;;  %1554 = vst.msk [vmem:[%s3447_s20 + $0x90] sm:$0xff] %vm1535_vm1, %v3456_v61  ;;  %v3477_v45 = vadd.f32 %v2658_v41, %v3440_v55  ;;  %v1475_v22 = vpop.f32.mrb[7].mxu1  ;;  %v2445_v60 = vld [vmem:[%s3910_s10] ss:$0 sm:$0xff] }
 0x204   : > { %1536 = vst.msk [vmem:[%s3447_s20] sm:$0xff] %vm1535_vm1, %v3453_v43  ;;  %v3471_v44 = vadd.f32 %v3440_v55, %v1411_v37  ;;  %1552 = vst.msk [vmem:[%s3447_s20 + $0x80] sm:$0xff] %vm1535_vm1, %v3465_v56  ;;  %v3486_v46 = vadd.f32 %v3440_v55, %v1475_v22 }
 0x205   : > { %1539 = vst.msk [vmem:[%s3447_s20 + $0x18] sm:$0xff] %vm1535_vm1, %v3462_v16  ;;  %1555 = vst.msk [vmem:[%s3447_s20 + $0x98] sm:$0xff] %vm1535_vm1, %v3477_v45 }
 0x206   : > { %1537 = vst.msk [vmem:[%s3447_s20 + $0x8] sm:$0xff] %vm1535_vm1, %v3471_v44  ;;  %1553 = vst.msk [vmem:[%s3447_s20 + $0x88] sm:$0xff] %vm1535_vm1, %v3486_v46 }
 0x209   : > { %v2645_v52 = vpop.f32.mrb[36].mxu0 }
 0x20a   : > { %v3498_v63 = vadd.f32 %v2645_v52, %v3440_v55  ;;  %v1424_v2 = vpop.f32.mrb[37].mxu0 }
 0x20b   : > { %v3501_v4 = vadd.f32 %v3440_v55, %v1424_v2  ;;  %v2646_v51 = vpop.f32.mrb[38].mxu0 }
 0x20c   : > { %1542 = vst.msk [vmem:[%s3447_s20 + $0x30] sm:$0xff] %vm1535_vm1, %v3498_v63  ;;  %v3507_v5 = vadd.f32 %v2646_v51, %v3440_v55  ;;  %v1427_v47 = vpop.f32.mrb[39].mxu0 }
 0x20d   : > { %1540 = vst.msk [vmem:[%s3447_s20 + $0x20] sm:$0xff] %vm1535_vm1, %v3501_v4  ;;  %v3513_v15 = vadd.f32 %v3440_v55, %v1427_v47 }
 0x20e   : > { %v2661_v9 = vpop.f32.mrb[8].mxu1  ;;  %1543 = vst.msk [vmem:[%s3447_s20 + $0x38] sm:$0xff] %vm1535_vm1, %v3507_v5 }
 0x20f   : > { %v3519_v58 = vadd.f32 %v2661_v9, %v3440_v55  ;;  %v1488_v17 = vpop.f32.mrb[9].mxu1  ;;  %1541 = vst.msk [vmem:[%s3447_s20 + $0x28] sm:$0xff] %vm1535_vm1, %v3513_v15 }
 0x210   : > { %v3525_v50 = vadd.f32 %v3440_v55, %v1488_v17  ;;  %v2662_v24 = vpop.f32.mrb[10].mxu1 }
 0x211   : > { %1558 = vst.msk [vmem:[%s3447_s20 + $0xb0] sm:$0xff] %vm1535_vm1, %v3519_v58  ;;  %v3531_v62 = vadd.f32 %v2662_v24, %v3440_v55  ;;  %v1491_v0 = vpop.f32.mrb[11].mxu1 }
 0x212   : > { %1556 = vst.msk [vmem:[%s3447_s20 + $0xa0] sm:$0xff] %vm1535_vm1, %v3525_v50  ;;  %v3537_v25 = vadd.f32 %v3440_v55, %v1491_v0 }
 0x213   : > { %1559 = vst.msk [vmem:[%s3447_s20 + $0xb8] sm:$0xff] %vm1535_vm1, %v3531_v62 }
 0x214   : > { %1557 = vst.msk [vmem:[%s3447_s20 + $0xa8] sm:$0xff] %vm1535_vm1, %v3537_v25 }
 0x216   : > { %v2649_v18 = vpop.f32.mrb[40].mxu0 }
 0x217   : > { %v3546_v19 = vadd.f32 %v2649_v18, %v3440_v55  ;;  %v1440_v26 = vpop.f32.mrb[41].mxu0 }
 0x218   : > { %v3549_v10 = vadd.f32 %v3440_v55, %v1440_v26  ;;  %v2650_v35 = vpop.f32.mrb[42].mxu0  ;;  %v2665_v30 = vpop.f32.mrb[12].mxu1 }
 0x219   : > { %1546 = vst.msk [vmem:[%s3447_s20 + $0x50] sm:$0xff] %vm1535_vm1, %v3546_v19  ;;  %v3555_v57 = vadd.f32 %v2650_v35, %v3440_v55  ;;  %v1443_v31 = vpop.f32.mrb[43].mxu0  ;;  %v3558_v1 = vadd.f32 %v2665_v30, %v3440_v55  ;;  %v1504_v59 = vpop.f32.mrb[13].mxu1 }
 0x21a   : > { %1544 = vst.msk [vmem:[%s3447_s20 + $0x40] sm:$0xff] %vm1535_vm1, %v3549_v10  ;;  %v3564_v11 = vadd.f32 %v3440_v55, %v1443_v31  ;;  %v3567_v27 = vadd.f32 %v3440_v55, %v1504_v59  ;;  %v2666_v29 = vpop.f32.mrb[14].mxu1 }
 0x21b   : > { %1547 = vst.msk [vmem:[%s3447_s20 + $0x58] sm:$0xff] %vm1535_vm1, %v3555_v57  ;;  %1562 = vst.msk [vmem:[%s3447_s20 + $0xd0] sm:$0xff] %vm1535_vm1, %v3558_v1  ;;  %v3576_v32 = vadd.f32 %v2666_v29, %v3440_v55  ;;  %v1507_v33 = vpop.f32.mrb[15].mxu1 }
 0x21c   : > { %1545 = vst.msk [vmem:[%s3447_s20 + $0x48] sm:$0xff] %vm1535_vm1, %v3564_v11  ;;  %1560 = vst.msk [vmem:[%s3447_s20 + $0xc0] sm:$0xff] %vm1535_vm1, %v3567_v27  ;;  %v3585_v34 = vadd.f32 %v3440_v55, %v1507_v33 }
 0x21d   : > { %1563 = vst.msk [vmem:[%s3447_s20 + $0xd8] sm:$0xff] %vm1535_vm1, %v3576_v32 }
 0x21e   : > { %1561 = vst.msk [vmem:[%s3447_s20 + $0xc8] sm:$0xff] %vm1535_vm1, %v3585_v34  ;;  %v2653_v54 = vpop.f32.mrb[44].mxu0 }
 0x21f   : > { %v3594_v36 = vadd.f32 %v2653_v54, %v3440_v55  ;;  %v1456_v38 = vpop.f32.mrb[45].mxu0 }
 0x220   : > { %v3597_v21 = vadd.f32 %v3440_v55, %v1456_v38  ;;  %v2654_v13 = vpop.f32.mrb[46].mxu0  ;;  %v2669_v12 = vpop.f32.mrb[16].mxu1 }
 0x221   : > { %1550 = vst.msk [vmem:[%s3447_s20 + $0x70] sm:$0xff] %vm1535_vm1, %v3594_v36  ;;  %v3603_v8 = vadd.f32 %v2654_v13, %v3440_v55  ;;  %v1459_v39 = vpop.f32.mrb[47].mxu0  ;;  %v3606_v53 = vadd.f32 %v2669_v12, %v3440_v55  ;;  %v1520_v40 = vpop.f32.mrb[17].mxu1 }
 0x222   : > { %1548 = vst.msk [vmem:[%s3447_s20 + $0x60] sm:$0xff] %vm1535_vm1, %v3597_v21  ;;  %v3612_v49 = vadd.f32 %v3440_v55, %v1459_v39  ;;  %v3615_v6 = vadd.f32 %v3440_v55, %v1520_v40  ;;  %v2670_v14 = vpop.f32.mrb[18].mxu1 }
 0x223   : > { %1551 = vst.msk [vmem:[%s3447_s20 + $0x78] sm:$0xff] %vm1535_vm1, %v3603_v8  ;;  %1566 = vst.msk [vmem:[%s3447_s20 + $0xf0] sm:$0xff] %vm1535_vm1, %v3606_v53  ;;  %v3624_v23 = vadd.f32 %v2670_v14, %v3440_v55  ;;  %v1523_v42 = vpop.f32.mrb[19].mxu1 }
 0x224   : > { %1549 = vst.msk [vmem:[%s3447_s20 + $0x68] sm:$0xff] %vm1535_vm1, %v3612_v49  ;;  %1564 = vst.msk [vmem:[%s3447_s20 + $0xe0] sm:$0xff] %vm1535_vm1, %v3615_v6  ;;  %v3633_v3 = vadd.f32 %v3440_v55, %v1523_v42 }
 0x225   : > { %1567 = vst.msk [vmem:[%s3447_s20 + $0xf8] sm:$0xff] %vm1535_vm1, %v3624_v23 }
 0x226   : > { %1565 = vst.msk [vmem:[%s3447_s20 + $0xe8] sm:$0xff] %vm1535_vm1, %v3633_v3  ;;  %v1647_v48 = vpop.f32.mrb[48].mxu0 }
 0x227   : > { %v1648_v37 = vadd.f32 %v2445_v60, %v1647_v48  ;;  %v2679_v41 = vpop.f32.mrb[49].mxu0 }
 0x229   : > { %v2448_v22 = vmul.f32 -1.442695, %v1648_v37 }
 0x22b   : > { %2800 = vpow2.f32 %v2448_v22 }
 0x22c   : > { %v1729_v52 = vpop.f32.mrb[50].mxu0 }
 0x22d   : > { %v2688_v2 = vpop.f32.mrb[51].mxu0  ;;  %v1805_v47 = vrot.slane %v1729_v52, %v3132_v7 }
 0x22f   : > { %v1806_v9 = vcombine.high %v1805_v47, %v1805_v47  ;;  %v1813_v0 = vrot.slane %v1805_v47, %v3132_v7 }
 0x231   : > { %v1820_v18 = vrot.slane %v1806_v9, %v3132_v7  ;;  %v3654_v59 = vrot.slane %v1813_v0, %v3142_v20 }
 0x233   : > { %v3657_v29 = vrot.slane %v1820_v18, %v3142_v20 }
 0x235   : > { %v2801_v51 = vpop.eup %2800 }
 0x236   : > { %v1654_v55 = vadd.f32 1.0, %v2801_v51 }
 0x238   : > { %2802 = vrcp.f32 %v1654_v55 }
 0x242   : > { %v2803_v17 = vpop.eup %2802 }
 0x243   : > { %v1740_v24 = vrot.slane %v2803_v17, %v3132_v7 }
 0x245   : > { %v1741_v26 = vcombine.high %v1740_v24, %v1740_v24  ;;  %v1748_v35 = vrot.slane %v1740_v24, %v3132_v7 }
 0x247   : > { %v1755_v30 = vrot.slane %v1741_v26, %v3132_v7  ;;  %v3651_v31 = vrot.slane %v1748_v35, %v3142_v20 }
 0x249   : > { %v3660_v33 = vrot.slane %v1755_v30, %v3142_v20  ;;  %v1766_v54 = vmul.f32 %v3651_v31, %v3453_v43  ;;  %v1767_v38 = vmul.f32 %v3651_v31, %v3471_v44  ;;  %v1768_v7 = vmul.f32 %v3651_v31, %v3450_v28 }
 0x24a   : > { %v1769_v13 = vmul.f32 %v3651_v31, %v3462_v16  ;;  %v1770_v12 = vmul.f32 %v3651_v31, %v3501_v4  ;;  %v1771_v39 = vmul.f32 %v3651_v31, %v3513_v15  ;;  %v1772_v20 = vmul.f32 %v3651_v31, %v3498_v63 }
 0x24b   : > { %v1831_v43 = vadd.f32 %v3654_v59, %v1766_v54  ;;  %v1832_v40 = vadd.f32 %v3654_v59, %v1767_v38  ;;  %v1833_v44 = vadd.f32 %v3654_v59, %v1768_v7  ;;  %v1773_v28 = vmul.f32 %v3651_v31, %v3507_v5 }
 0x24c   : > { %v1834_v16 = vadd.f32 %v3654_v59, %v1769_v13  ;;  %v1835_v14 = vadd.f32 %v3654_v59, %v1770_v12  ;;  %v1836_v4 = vadd.f32 %v3654_v59, %v1771_v39  ;;  %v1837_v15 = vadd.f32 %v3654_v59, %v1772_v20 }
 0x24d   : > { %vm1863_vm3 = vcmp.ge.f32.partialorder %v1831_v43, 0.0  ;;  %vm1864_vm4 = vcmp.ge.f32.partialorder %v1832_v40, 0.0  ;;  %v1895_v63 = vmul.f32 0.01, %v1831_v43  ;;  %v1896_v42 = vmul.f32 0.01, %v1832_v40 }
 0x24e   : > { %vm1865_vm9 = vcmp.ge.f32.partialorder %v1833_v44, 0.0  ;;  %vm1866_vm11 = vcmp.ge.f32.partialorder %v1834_v16, 0.0  ;;  %v1897_v60 = vmul.f32 0.01, %v1833_v44  ;;  %v1898_v48 = vmul.f32 0.01, %v1834_v16 }
 0x24f   : > { %v1927_v37 = vsel %vm1863_vm3, %v1831_v43, %v1895_v63  ;;  %v1928_v41 = vsel %vm1864_vm4, %v1832_v40, %v1896_v42  ;;  %vm1867_vm12 = vcmp.ge.f32.partialorder %v1835_v14, 0.0  ;;  %vm1868_vm13 = vcmp.ge.f32.partialorder %v1836_v4, 0.0 }
 0x250   : > { %v1959_v5 = vpack.c.bf16 %v1928_v41, %v1927_v37  ;;  %v1929_v22 = vsel %vm1865_vm9, %v1833_v44, %v1897_v60  ;;  %v1930_v52 = vsel %vm1866_vm11, %v1834_v16, %v1898_v48  ;;  %v1899_v2 = vmul.f32 0.01, %v1835_v14 }
 0x251   : > { %v1960_v51 = vpack.c.bf16 %v1930_v52, %v1929_v22  ;;  %v1900_v55 = vmul.f32 0.01, %v1836_v4  ;;  %v1838_v47 = vadd.f32 %v3654_v59, %v1773_v28  ;;  %vm1869_vm14 = vcmp.ge.f32.partialorder %v1837_v15, 0.0 }
 0x252   : > { %2697 = vmatprep.mubr.msk.bf16.mxu1 %vm1535_vm1, %v1959_v5  ;;  %v1931_v9 = vsel %vm1867_vm12, %v1835_v14, %v1899_v2  ;;  %v1901_v17 = vmul.f32 0.01, %v1837_v15  ;;  %v1774_v24 = vmul.f32 %v3651_v31, %v3549_v10  ;;  %v1775_v0 = vmul.f32 %v3651_v31, %v3564_v11 }
 0x253   : > { %2698 = vmatmul.mubr.msk.bf16.vlgmr.msra.gmra.mrb[20].mxu1 %vm1535_vm1, %v1960_v51  ;;  %v1932_v18 = vsel %vm1868_vm13, %v1836_v4, %v1900_v55  ;;  %vm1870_vm15 = vcmp.ge.f32.partialorder %v1838_v47, 0.0  ;;  %v1902_v26 = vmul.f32 0.01, %v1838_v47  ;;  %v1776_v35 = vmul.f32 %v3651_v31, %v3546_v19 }
 0x254   : > { %v1961_v30 = vpack.c.bf16 %v1932_v18, %v1931_v9  ;;  %v1933_v54 = vsel %vm1869_vm14, %v1837_v15, %v1901_v17  ;;  %v1839_v38 = vadd.f32 %v3654_v59, %v1774_v24  ;;  %v1840_v7 = vadd.f32 %v3654_v59, %v1775_v0 }
 0x255   : > { %v1934_v13 = vsel %vm1870_vm15, %v1838_v47, %v1902_v26  ;;  %v1777_v10 = vmul.f32 %v3651_v31, %v3555_v57  ;;  %v1841_v11 = vadd.f32 %v3654_v59, %v1776_v35  ;;  %v1778_v12 = vmul.f32 %v3651_v31, %v3597_v21 }
 0x256   : > { %2701 = vmatprep.mubr.msk.bf16.mxu1 %vm1535_vm1, %v1961_v30  ;;  %v1962_v39 = vpack.c.bf16 %v1934_v13, %v1933_v54  ;;  %vm1871_vm5 = vcmp.ge.f32.partialorder %v1839_v38, 0.0  ;;  %vm1872_vm6 = vcmp.ge.f32.partialorder %v1840_v7, 0.0  ;;  %v1903_v19 = vmul.f32 0.01, %v1839_v38 }
 0x257   : > { %v1904_v20 = vmul.f32 0.01, %v1840_v7  ;;  %v1842_v43 = vadd.f32 %v3654_v59, %v1777_v10  ;;  %vm1873_vm8 = vcmp.ge.f32.partialorder %v1841_v11, 0.0  ;;  %v1905_v40 = vmul.f32 0.01, %v1841_v11 }
 0x258   : > { %v1935_v44 = vsel %vm1871_vm5, %v1839_v38, %v1903_v19  ;;  %v1779_v57 = vmul.f32 %v3651_v31, %v3612_v49  ;;  %v1843_v28 = vadd.f32 %v3654_v59, %v1778_v12  ;;  %v1780_v21 = vmul.f32 %v3651_v31, %v3594_v36 }
 0x259   : > { %v1936_v16 = vsel %vm1872_vm6, %v1840_v7, %v1904_v20  ;;  %vm1874_vm2 = vcmp.ge.f32.partialorder %v1842_v43, 0.0  ;;  %v1906_v14 = vmul.f32 0.01, %v1842_v43  ;;  %v1937_v4 = vsel %vm1873_vm8, %v1841_v11, %v1905_v40 }
 0x25a   : > { %v1963_v15 = vpack.c.bf16 %v1936_v16, %v1935_v44  ;;  %v1844_v63 = vadd.f32 %v3654_v59, %v1779_v57  ;;  %vm1875_vm10 = vcmp.ge.f32.partialorder %v1843_v28, 0.0  ;;  %v1907_v42 = vmul.f32 0.01, %v1843_v28 }
 0x25b   : > { %2702 = vmatmul.mubr.msk.bf16.gmra.mrb[24].mxu1 %vm1535_vm1, %v1962_v39  ;;  %v1938_v60 = vsel %vm1874_vm2, %v1842_v43, %v1906_v14  ;;  %v1781_v49 = vmul.f32 %v3651_v31, %v3603_v8  ;;  %v1845_v48 = vadd.f32 %v3654_v59, %v1780_v21  ;;  %v1782_v36 = vmul.f32 %v3660_v33, %v3465_v56 }
 0x25c   : > { %2705 = vmatprep.mubr.msk.bf16.mxu1 %vm1535_vm1, %v1963_v15  ;;  %v1964_v37 = vpack.c.bf16 %v1938_v60, %v1937_v4  ;;  %vm1876_vm7 = vcmp.ge.f32.partialorder %v1844_v63, 0.0  ;;  %v1908_v41 = vmul.f32 0.01, %v1844_v63  ;;  %v1939_v5 = vsel %vm1875_vm10, %v1843_v28, %v1907_v42 }
 0x25d   : > { %v1846_v22 = vadd.f32 %v3654_v59, %v1781_v49  ;;  %vm1877_vm0 = vcmp.ge.f32.partialorder %v1845_v48, 0.0  ;;  %v1909_v52 = vmul.f32 0.01, %v1845_v48  ;;  %v1783_v2 = vmul.f32 %v3660_v33, %v3486_v46 }
 0x25e   : > { %v1940_v51 = vsel %vm1876_vm7, %v1844_v63, %v1908_v41  ;;  %v1847_v8 = vadd.f32 %v3657_v29, %v1782_v36  ;;  %v1784_v31 = vmul.f32 %v3660_v33, %v3456_v61  ;;  %v1785_v56 = vmul.f32 %v3660_v33, %v3477_v45 }
 0x25f   : > { %v1965_v55 = vpack.c.bf16 %v1940_v51, %v1939_v5  ;;  %vm1878_vm3 = vcmp.ge.f32.partialorder %v1846_v22, 0.0  ;;  %v1910_v47 = vmul.f32 0.01, %v1846_v22  ;;  %v1941_v9 = vsel %vm1877_vm0, %v1845_v48, %v1909_v52 }
 0x260   : > { %v1848_v59 = vadd.f32 %v3657_v29, %v1783_v2  ;;  %vm1879_vm4 = vcmp.ge.f32.partialorder %v1847_v8, 0.0  ;;  %v1911_v17 = vmul.f32 0.01, %v1847_v8  ;;  %v1849_v24 = vadd.f32 %v3657_v29, %v1784_v31 }
 0x261   : > { %v1942_v46 = vsel %vm1878_vm3, %v1846_v22, %v1910_v47  ;;  %v1850_v0 = vadd.f32 %v3657_v29, %v1785_v56  ;;  %v1786_v18 = vmul.f32 %v3660_v33, %v3525_v50  ;;  %v1787_v61 = vmul.f32 %v3660_v33, %v3537_v25 }
 0x262   : > { %v1966_v45 = vpack.c.bf16 %v1942_v46, %v1941_v9  ;;  %vm1880_vm9 = vcmp.ge.f32.partialorder %v1848_v59, 0.0  ;;  %v1912_v26 = vmul.f32 0.01, %v1848_v59  ;;  %v1943_v35 = vsel %vm1879_vm4, %v1847_v8, %v1911_v17 }
 0x263   : > { %2706 = vmatmul.mubr.msk.bf16.gmra.mrb[28].mxu1 %vm1535_vm1, %v1964_v37  ;;  %vm1881_vm11 = vcmp.ge.f32.partialorder %v1849_v24, 0.0  ;;  %vm1882_vm12 = vcmp.ge.f32.partialorder %v1850_v0, 0.0  ;;  %v1913_v30 = vmul.f32 0.01, %v1849_v24  ;;  %v1914_v54 = vmul.f32 0.01, %v1850_v0 }
 0x264   : > { %2709 = vmatprep.mubr.msk.bf16.mxu1 %vm1535_vm1, %v1965_v55  ;;  %v1944_v38 = vsel %vm1880_vm9, %v1848_v59, %v1912_v26  ;;  %v1851_v7 = vadd.f32 %v3657_v29, %v1786_v18  ;;  %v1852_v50 = vadd.f32 %v3657_v29, %v1787_v61  ;;  %v1788_v25 = vmul.f32 %v3660_v33, %v3519_v58 }
 0x265   : > { %v1967_v13 = vpack.c.bf16 %v1944_v38, %v1943_v35  ;;  %v1945_v10 = vsel %vm1881_vm11, %v1849_v24, %v1913_v30  ;;  %v1946_v11 = vsel %vm1882_vm12, %v1850_v0, %v1914_v54  ;;  %v1789_v12 = vmul.f32 %v3660_v33, %v3531_v62 }
 0x266   : > { %v1968_v39 = vpack.c.bf16 %v1946_v11, %v1945_v10  ;;  %vm1883_vm13 = vcmp.ge.f32.partialorder %v1851_v7, 0.0  ;;  %vm1884_vm14 = vcmp.ge.f32.partialorder %v1852_v50, 0.0  ;;  %v1915_v19 = vmul.f32 0.01, %v1851_v7 }
 0x267   : > { %v1916_v20 = vmul.f32 0.01, %v1852_v50  ;;  %v1853_v43 = vadd.f32 %v3657_v29, %v1788_v25  ;;  %v1854_v40 = vadd.f32 %v3657_v29, %v1789_v12  ;;  %v1790_v44 = vmul.f32 %v3660_v33, %v3567_v27 }
 0x268   : > { %v1947_v57 = vsel %vm1883_vm13, %v1851_v7, %v1915_v19  ;;  %v1791_v58 = vmul.f32 %v3660_v33, %v3585_v34  ;;  %v1792_v28 = vmul.f32 %v3660_v33, %v3558_v1  ;;  %v1793_v62 = vmul.f32 %v3660_v33, %v3576_v32 }
 0x269   : > { %v1948_v21 = vsel %vm1884_vm14, %v1852_v50, %v1916_v20  ;;  %vm1885_vm15 = vcmp.ge.f32.partialorder %v1853_v43, 0.0  ;;  %vm1886_vm5 = vcmp.ge.f32.partialorder %v1854_v40, 0.0  ;;  %v1917_v16 = vmul.f32 0.01, %v1853_v43 }
 0x26a   : > { %v1969_v14 = vpack.c.bf16 %v1948_v21, %v1947_v57  ;;  %v1918_v4 = vmul.f32 0.01, %v1854_v40  ;;  %v1855_v15 = vadd.f32 %v3657_v29, %v1790_v44  ;;  %v1856_v27 = vadd.f32 %v3657_v29, %v1791_v58 }
 0x26b   : > { %2710 = vmatmul.mubr.msk.bf16.gmra.mrb[32].mxu1 %vm1535_vm1, %v1966_v45  ;;  %v1949_v63 = vsel %vm1885_vm15, %v1853_v43, %v1917_v16  ;;  %v1857_v34 = vadd.f32 %v3657_v29, %v1792_v28  ;;  %v1858_v1 = vadd.f32 %v3657_v29, %v1793_v62  ;;  %v1794_v32 = vmul.f32 %v3660_v33, %v3615_v6 }
 0x26c   : > { %2713 = vmatprep.mubr.msk.bf16.mxu1 %vm1535_vm1, %v1967_v13  ;;  %v1950_v42 = vsel %vm1886_vm5, %v1854_v40, %v1918_v4  ;;  %vm1887_vm6 = vcmp.ge.f32.partialorder %v1855_v15, 0.0  ;;  %vm1888_vm8 = vcmp.ge.f32.partialorder %v1856_v27, 0.0  ;;  %v1919_v60 = vmul.f32 0.01, %v1855_v15 }
 0x26d   : > { %v1970_v49 = vpack.c.bf16 %v1950_v42, %v1949_v63  ;;  %v1920_v48 = vmul.f32 0.01, %v1856_v27  ;;  %vm1889_vm2 = vcmp.ge.f32.partialorder %v1857_v34, 0.0  ;;  %vm1890_vm10 = vcmp.ge.f32.partialorder %v1858_v1, 0.0 }
 0x26e   : > { %v1951_v36 = vsel %vm1887_vm6, %v1855_v15, %v1919_v60  ;;  %v1921_v37 = vmul.f32 0.01, %v1857_v34  ;;  %v1922_v41 = vmul.f32 0.01, %v1858_v1  ;;  %v1795_v5 = vmul.f32 %v3660_v33, %v3633_v3 }
 0x26f   : > { %v1952_v22 = vsel %vm1888_vm8, %v1856_v27, %v1920_v48  ;;  %v1859_v52 = vadd.f32 %v3657_v29, %v1794_v32  ;;  %v1796_v6 = vmul.f32 %v3660_v33, %v3606_v53  ;;  %v1797_v2 = vmul.f32 %v3660_v33, %v3624_v23 }
 0x270   : > { %v1971_v51 = vpack.c.bf16 %v1952_v22, %v1951_v36  ;;  %v1953_v8 = vsel %vm1889_vm2, %v1857_v34, %v1921_v37  ;;  %v1954_v31 = vsel %vm1890_vm10, %v1858_v1, %v1922_v41  ;;  %v1860_v56 = vadd.f32 %v3657_v29, %v1795_v5 }
 0x271   : > { %v1972_v55 = vpack.c.bf16 %v1954_v31, %v1953_v8  ;;  %vm1891_vm7 = vcmp.ge.f32.partialorder %v1859_v52, 0.0  ;;  %v1923_v47 = vmul.f32 0.01, %v1859_v52  ;;  %v1861_v9 = vadd.f32 %v3657_v29, %v1796_v6 }
 0x272   : > { %vm1892_vm0 = vcmp.ge.f32.partialorder %v1860_v56, 0.0  ;;  %v1924_v3 = vmul.f32 0.01, %v1860_v56  ;;  %v1862_v59 = vadd.f32 %v3657_v29, %v1797_v2  ;;  %v3780_v29 = vld [vmem:[%s3913_s13] ss:$0 sm:$0xff] }
 0x273   : > { %2714 = vmatmul.mubr.msk.bf16.gmra.mrb[36].mxu1 %vm1535_vm1, %v1968_v39  ;;  %v1955_v53 = vsel %vm1891_vm7, %v1859_v52, %v1923_v47  ;;  %vm1893_vm3 = vcmp.ge.f32.partialorder %v1861_v9, 0.0  ;;  %v1925_v23 = vmul.f32 0.01, %v1861_v9 }
 0x274   : > { %2717 = vmatprep.mubr.msk.bf16.mxu1 %vm1535_vm1, %v1969_v14  ;;  %v1956_v33 = vsel %vm1892_vm0, %v1860_v56, %v1924_v3  ;;  %vm1894_vm4 = vcmp.ge.f32.partialorder %v1862_v59, 0.0  ;;  %v1926_v17 = vmul.f32 0.01, %v1862_v59 }
 0x275   : > { %v1973_v24 = vpack.c.bf16 %v1956_v33, %v1955_v53  ;;  %v1957_v46 = vsel %vm1893_vm3, %v1861_v9, %v1925_v23 }
 0x276   : > { %v1958_v0 = vsel %vm1894_vm4, %v1862_v59, %v1926_v17 }
 0x277   : > { %v1974_v18 = vpack.c.bf16 %v1958_v0, %v1957_v46 }
 0x27b   : > { %2718 = vmatmul.mubr.msk.bf16.gmra.mrb[40].mxu1 %vm1535_vm1, %v1970_v49 }
 0x27c   : > { %2721 = vmatprep.mubr.msk.bf16.mxu1 %vm1535_vm1, %v1971_v51 }
 0x283   : > { %2722 = vmatmul.mubr.msk.bf16.gmra.mrb[44].mxu1 %vm1535_vm1, %v1972_v55 }
 0x284   : > { %2725 = vmatprep.mubr.msk.bf16.mxu1 %vm1535_vm1, %v1973_v24 }
 0x28b   : > { %2726 = vmatmul.mubr.msk.bf16.gmra.mrb[48].mxu1 %vm1535_vm1, %v1974_v18 }
 0x326   : > { %v2699_v61 = vpop.f32.mrb[20].mxu1 }
 0x327   : > { %v2105_v45 = vadd.f32 %v2699_v61, %v3780_v29  ;;  %v2096_v26 = vpop.f32.mrb[21].mxu1 }
 0x328   : > { %v2097_v35 = vadd.f32 %v3780_v29, %v2096_v26  ;;  %v2700_v30 = vpop.f32.mrb[22].mxu1 }
 0x329   : > { %2225 = vst [vmem:[%s3784_s16 + $0x10] sm:$0xff] %v2105_v45  ;;  %v2108_v54 = vadd.f32 %v2700_v30, %v3780_v29  ;;  %v2099_v38 = vpop.f32.mrb[23].mxu1 }
 0x32a   : > { %2223 = vst [vmem:[%s3784_s16] sm:$0xff] %v2097_v35  ;;  %v2100_v7 = vadd.f32 %v3780_v29, %v2099_v38 }
 0x32b   : > { %2226 = vst [vmem:[%s3784_s16 + $0x18] sm:$0xff] %v2108_v54 }
 0x32c   : > { %2224 = vst [vmem:[%s3784_s16 + $0x8] sm:$0xff] %v2100_v7 }
 0x32e   : > { %v2703_v50 = vpop.f32.mrb[24].mxu1 }
 0x32f   : > { %v2121_v25 = vadd.f32 %v2703_v50, %v3780_v29  ;;  %v2112_v13 = vpop.f32.mrb[25].mxu1 }
 0x330   : > { %v2113_v10 = vadd.f32 %v3780_v29, %v2112_v13  ;;  %v2704_v11 = vpop.f32.mrb[26].mxu1 }
 0x331   : > { %2229 = vst [vmem:[%s3784_s16 + $0x30] sm:$0xff] %v2121_v25  ;;  %v2124_v12 = vadd.f32 %v2704_v11, %v3780_v29  ;;  %v2115_v39 = vpop.f32.mrb[27].mxu1 }
 0x332   : > { %2227 = vst [vmem:[%s3784_s16 + $0x20] sm:$0xff] %v2113_v10  ;;  %v2116_v19 = vadd.f32 %v3780_v29, %v2115_v39 }
 0x333   : > { %2230 = vst [vmem:[%s3784_s16 + $0x38] sm:$0xff] %v2124_v12 }
 0x334   : > { %2228 = vst [vmem:[%s3784_s16 + $0x28] sm:$0xff] %v2116_v19 }
 0x336   : > { %v2707_v20 = vpop.f32.mrb[28].mxu1 }
 0x337   : > { %v2137_v43 = vadd.f32 %v2707_v20, %v3780_v29  ;;  %v2128_v40 = vpop.f32.mrb[29].mxu1 }
 0x338   : > { %v2129_v44 = vadd.f32 %v3780_v29, %v2128_v40  ;;  %v2708_v57 = vpop.f32.mrb[30].mxu1 }
 0x339   : > { %2233 = vst [vmem:[%s3784_s16 + $0x50] sm:$0xff] %v2137_v43  ;;  %v2140_v58 = vadd.f32 %v2708_v57, %v3780_v29  ;;  %v2131_v28 = vpop.f32.mrb[31].mxu1 }
 0x33a   : > { %2231 = vst [vmem:[%s3784_s16 + $0x40] sm:$0xff] %v2129_v44  ;;  %v2132_v62 = vadd.f32 %v3780_v29, %v2131_v28 }
 0x33b   : > { %2234 = vst [vmem:[%s3784_s16 + $0x58] sm:$0xff] %v2140_v58 }
 0x33c   : > { %2232 = vst [vmem:[%s3784_s16 + $0x48] sm:$0xff] %v2132_v62 }
 0x33e   : > { %v2711_v21 = vpop.f32.mrb[32].mxu1 }
 0x33f   : > { %v2153_v16 = vadd.f32 %v2711_v21, %v3780_v29  ;;  %v2144_v14 = vpop.f32.mrb[33].mxu1 }
 0x340   : > { %v2145_v4 = vadd.f32 %v3780_v29, %v2144_v14  ;;  %v2712_v15 = vpop.f32.mrb[34].mxu1 }
 0x341   : > { %2237 = vst [vmem:[%s3784_s16 + $0x70] sm:$0xff] %v2153_v16  ;;  %v2156_v27 = vadd.f32 %v2712_v15, %v3780_v29  ;;  %v2147_v63 = vpop.f32.mrb[35].mxu1 }
 0x342   : > { %2235 = vst [vmem:[%s3784_s16 + $0x60] sm:$0xff] %v2145_v4  ;;  %v2148_v34 = vadd.f32 %v3780_v29, %v2147_v63 }
 0x343   : > { %2238 = vst [vmem:[%s3784_s16 + $0x78] sm:$0xff] %v2156_v27 }
 0x344   : > { %2236 = vst [vmem:[%s3784_s16 + $0x68] sm:$0xff] %v2148_v34 }
 0x346   : > { %v2715_v1 = vpop.f32.mrb[36].mxu1 }
 0x347   : > { %v2169_v32 = vadd.f32 %v2715_v1, %v3780_v29  ;;  %v2160_v42 = vpop.f32.mrb[37].mxu1 }
 0x348   : > { %v2161_v60 = vadd.f32 %v3780_v29, %v2160_v42  ;;  %v2716_v49 = vpop.f32.mrb[38].mxu1 }
 0x349   : > { %2241 = vst [vmem:[%s3784_s16 + $0x90] sm:$0xff] %v2169_v32  ;;  %v2172_v48 = vadd.f32 %v2716_v49, %v3780_v29  ;;  %v2163_v36 = vpop.f32.mrb[39].mxu1 }
 0x34a   : > { %2239 = vst [vmem:[%s3784_s16 + $0x80] sm:$0xff] %v2161_v60  ;;  %v2164_v37 = vadd.f32 %v3780_v29, %v2163_v36 }
 0x34b   : > { %2242 = vst [vmem:[%s3784_s16 + $0x98] sm:$0xff] %v2172_v48 }
 0x34c   : > { %2240 = vst [vmem:[%s3784_s16 + $0x88] sm:$0xff] %v2164_v37 }
 0x34e   : > { %v2719_v41 = vpop.f32.mrb[40].mxu1 }
 0x34f   : > { %v2185_v5 = vadd.f32 %v2719_v41, %v3780_v29  ;;  %v2176_v22 = vpop.f32.mrb[41].mxu1 }
 0x350   : > { %v2177_v52 = vadd.f32 %v3780_v29, %v2176_v22  ;;  %v2720_v6 = vpop.f32.mrb[42].mxu1 }
 0x351   : > { %2245 = vst [vmem:[%s3784_s16 + $0xb0] sm:$0xff] %v2185_v5  ;;  %v2188_v2 = vadd.f32 %v2720_v6, %v3780_v29  ;;  %v2179_v51 = vpop.f32.mrb[43].mxu1 }
 0x352   : > { %2243 = vst [vmem:[%s3784_s16 + $0xa0] sm:$0xff] %v2177_v52  ;;  %v2180_v8 = vadd.f32 %v3780_v29, %v2179_v51 }
 0x353   : > { %2246 = vst [vmem:[%s3784_s16 + $0xb8] sm:$0xff] %v2188_v2 }
 0x354   : > { %2244 = vst [vmem:[%s3784_s16 + $0xa8] sm:$0xff] %v2180_v8 }
 0x356   : > { %v2723_v31 = vpop.f32.mrb[44].mxu1 }
 0x357   : > { %v2201_v56 = vadd.f32 %v2723_v31, %v3780_v29  ;;  %v2192_v55 = vpop.f32.mrb[45].mxu1 }
 0x358   : > { %v2193_v47 = vadd.f32 %v3780_v29, %v2192_v55  ;;  %v2724_v9 = vpop.f32.mrb[46].mxu1 }
 0x359   : > { %2249 = vst [vmem:[%s3784_s16 + $0xd0] sm:$0xff] %v2201_v56  ;;  %v2204_v3 = vadd.f32 %v2724_v9, %v3780_v29  ;;  %v2195_v59 = vpop.f32.mrb[47].mxu1 }
 0x35a   : > { %2247 = vst [vmem:[%s3784_s16 + $0xc0] sm:$0xff] %v2193_v47  ;;  %v2196_v53 = vadd.f32 %v3780_v29, %v2195_v59 }
 0x35b   : > { %2250 = vst [vmem:[%s3784_s16 + $0xd8] sm:$0xff] %v2204_v3 }
 0x35c   : > { %2248 = vst [vmem:[%s3784_s16 + $0xc8] sm:$0xff] %v2196_v53 }
 0x35e   : > { %v2727_v23 = vpop.f32.mrb[48].mxu1 }
 0x35f   : > { %v2217_v33 = vadd.f32 %v2727_v23, %v3780_v29  ;;  %v2208_v17 = vpop.f32.mrb[49].mxu1 }
 0x360   : > { %v2209_v24 = vadd.f32 %v3780_v29, %v2208_v17  ;;  %v2728_v46 = vpop.f32.mrb[50].mxu1 }
 0x361   : > { %2253 = vst [vmem:[%s3784_s16 + $0xf0] sm:$0xff] %v2217_v33  ;;  %v2220_v0 = vadd.f32 %v2728_v46, %v3780_v29  ;;  %v2211_v18 = vpop.f32.mrb[51].mxu1 }
 0x362   : > { %2251 = vst [vmem:[%s3784_s16 + $0xe0] sm:$0xff] %v2209_v24  ;;  %v2212_v61 = vadd.f32 %v3780_v29, %v2211_v18 }
 0x363   : > { %2254 = vst [vmem:[%s3784_s16 + $0xf8] sm:$0xff] %v2220_v0 }
 0x364   : > { %2252 = vst [vmem:[%s3784_s16 + $0xe8] sm:$0xff] %v2212_v61 }
 0x365   : > { %2817 = shalt.err (!%p2814_p3)
}
 0x366   : > { %s2818_s30 = scalar_lea.hbm %s3849_s2, 4096  ;;  %s2822_s0 = scalar_lea.hbm %s3915_s15, 8192 }
 0x367   : > { %p2819_p4 = scmp.ne.s32.totalorder %s3849_s2, %s2818_s30  ;;  %p2823_p9 = scmp.lt.u32.totalorder %s3849_s2, %s3915_s15 }
 0x368   : > { %p2824_p10 = scmp.lt.u32.totalorder %s2822_s0, %s2818_s30  ;;  %p2826_p12 = scmp.lt.u32.totalorder %s2818_s30, %s3849_s2 }
 0x369   : > { %p2820_p7 = pnand %p2819_p4, %p2993_p5 }
 0x36a   : > { %p2825_p11 = por %p2824_p10, %p2823_p9 }
 0x36b   : > { %p2821_p8 = pneg %p2820_p7 }
 0x36c   : > { %p2827_p13 = por %p2826_p12, %p2825_p11 }
 0x36e   : > { %p2828_p0 = pnand %p2827_p13, %p2821_p8 }
 0x370   : > { %2831 = shalt.err (!%p2828_p0)
}
 0x371   : > { %s2873_s27 = smov 128   ;;  %s2874_s17 = smov 8  }
 0x372   : > { %2745 = dma.vmem_to_hbm [thread:$0]  (%p2993_p5), %s3851_s23, 4096, %s3849_s2, %s3859_s22, %s2873_s27, %s2873_s27, %s2874_s17  }
 0x373 PF: > { %p2751_p1 = scmp.ge.s32.totalorder %s2866_s21, 2  ;;  %s2300_s16 = sand.u32 1, %s2854_s18  }
 0x374   : > { %s2301_s30 = scalar_lea.sflag [#allocation3], %s2300_s16 }
 0x375   : > { %p2748_p2 = pnand %p2751_p1, %p2997_p6 }
 0x377   : > { %2849 = dma.done.wait (!%p2748_p2), %s2301_s30, 4096  }
 0x378   : > { %2851 = vsyncadd (!%p2748_p2), %s2301_s30, 4294963200  ;;  %s3929_s20 = sld [smem:[#allocation5_spill]]  ;;  %s3930_s0 = sld [smem:[#allocation6_spill]] }
 0x379   : > { %p26_p3 = scmp.ge.s32.totalorder %s2980_s24, 4   ;;  %s3931_s18 = smov %s2858_s19 }
 0x37a   : > { %s3934_s21 = smov %s2980_s24 }
 0x37b   :  { %28 = sbr.rel (!%p26_p3) target bundleno = 6 (0x6), region = 126 }
 0x37e   : > { %s3932_s19 = smov %s3929_s20  ;;  %s3933_s20 = smov %s3930_s0 }
 0x382   :  { %2306 = vsyncpa [#allocation3], 1 }
 0x383   :  { %2308 = vsyncpa [#allocation3 + $0x1], 1 }

</bundles_post_ra>
